<compile_context>
chip_gen: v7x
topology: tpu7x:2x2x1
jax: 0.10.0
libtpu: 0.0.40
codegen_flags: <defaults>
</compile_context>

<pallas_src>
import functools

import jax
import jax.numpy as jnp
import numpy as np
from jax.experimental import pallas as pl
from jax.experimental.pallas import tpu as pltpu

_EPS = 1e-5


def _layer_norm(x, gamma, beta):
    mu = jnp.mean(x, axis=-1, keepdims=True)
    var = jnp.mean(jnp.square(x - mu), axis=-1, keepdims=True)
    return (x - mu) * jax.lax.rsqrt(var + _EPS) * gamma + beta


def _softmax_last(x):  # pure-JAX reference only
    m = jnp.max(x, axis=-1, keepdims=True)
    e = jnp.exp(x - m)
    return e / jnp.sum(e, axis=-1, keepdims=True)


# --------------------------------------------------------------------------- #
# Pallas kernel: one SpecialEncoderLayer step on one (batch, query-tile).
# --------------------------------------------------------------------------- #
def _encoder_layer_kernel(value_ref, srcn_ref, tgt_ref,
                          wa_ref, wo_ref, bo_ref,
                          g2_ref, b2_ref, w1_ref, bf1_ref, w2_ref, bf2_ref,
                          out_ref, ctx_vmem, *, heads, d_k, q_tile):
    # ---- attention logits from the pre-normalized pair features ----
    # (LN gamma already folded into wa; beta dropped: softmax shift-invariant)
    srcn = srcn_ref[0]                                           # (TQ, L, d_in) bf16
    logits = jnp.einsum('qkd,dh->hqk', srcn, wa_ref[...],
                        preferred_element_type=jnp.float32)      # (H, TQ, L) f32
    m = jnp.max(logits, axis=-1, keepdims=True)
    e = jnp.exp(logits - m)
    # softmax denominator on the EUP via approximate reciprocal (eval-mode ok).
    attn = (e * pl.reciprocal(jnp.sum(e, axis=-1, keepdims=True),
                              approx=True)).astype(jnp.bfloat16)

    # ---- per-head attention apply into the ctx scratch (lane offset h*d_k) ----
    for h in range(heads):                                       # static, small
        a_h = attn[h]                                            # (TQ, L) bf16
        v_h = value_ref[0, :, :, h * d_k:(h + 1) * d_k]          # (N, L, d_k) bf16
        ctx_h = jnp.einsum('qk,nkd->nqd', a_h, v_h,
                           preferred_element_type=jnp.float32)   # (N, TQ, d_k)
        ctx_vmem[:, :, h * d_k:(h + 1) * d_k] = ctx_h

    tgt_q = tgt_ref[0]                                           # (N, TQ, d_model) f32
    n_seq, _, d_model = tgt_q.shape
    flat = n_seq * q_tile

    # ---- single full-K output projection (flattened to 2-D) ----
    ctx2 = ctx_vmem[...].reshape(flat, d_model).astype(jnp.bfloat16)
    proj = jnp.dot(ctx2, wo_ref[...],
                   preferred_element_type=jnp.float32) + bo_ref[...]

    x = tgt_q.reshape(flat, d_model) + proj                      # residual (dropout = id)

    # ---- feed-forward block, flattened to 2-D matmuls ----
    xn = _layer_norm(x, g2_ref[...], b2_ref[...])
    h1 = jnp.maximum(
        jnp.dot(xn.astype(jnp.bfloat16), w1_ref[...],
                preferred_element_type=jnp.float32) + bf1_ref[...], 0.0)
    ff = jnp.dot(h1.astype(jnp.bfloat16), w2_ref[...],
                 preferred_element_type=jnp.float32) + bf2_ref[...]

    out_ref[0] = (x + ff).reshape(n_seq, q_tile, d_model).astype(out_ref.dtype)


# --------------------------------------------------------------------------- #
# sizing helpers (generation-aware)
# --------------------------------------------------------------------------- #
def _round_up(x, m):
    return (x + m - 1) // m * m


def _padded_bytes(shape, dtype):
    """VMEM footprint with lane (128) / sublane padding."""
    itemsize = jnp.dtype(dtype).itemsize
    sublane = {4: 8, 2: 16, 1: 32}.get(itemsize, 8)
    dims = list(shape)
    if len(dims) >= 1:
        dims[-1] = _round_up(dims[-1], 128)
    if len(dims) >= 2:
        dims[-2] = _round_up(dims[-2], sublane)
    total = itemsize
    for d in dims:
        total *= d
    return total


def _tpu_vmem_bytes():
    try:
        info = pltpu.get_tpu_info()
        return int(getattr(info, "vmem_capacity_bytes", 128 << 20))
    except Exception:
        return 128 << 20


def _pick_q_tile(L, phys_vmem):
    max_tile = 128 if phys_vmem <= (64 << 20) else 256   # v7x vs v5e/v6e
    if L % 8 != 0:
        return L
    t = min(L, max_tile)
    t -= t % 8
    while t > 8 and L % t != 0:
        t -= 8
    return t if (t > 0 and L % t == 0) else L


# --------------------------------------------------------------------------- #
# one encoder layer
# --------------------------------------------------------------------------- #
def _special_encoder_layer(src_norm, tgt, p, *, heads, q_tile=None):
    B, L, L2, d_in = src_norm.shape
    Bt, N, Lt, d_model = tgt.shape
    assert B == Bt and L == L2 == Lt
    assert d_model % heads == 0
    d_k = d_model // heads
    d_ff = p['w_ff1'].shape[1]

    phys_vmem = _tpu_vmem_bytes()
    if q_tile is None:
        q_tile = _pick_q_tile(L, phys_vmem)
    assert L % q_tile == 0
    n_q = L // q_tile

    # ---- hoisted to XLA: value projection + pair-LN affine folding ----
    tgtn = _layer_norm(tgt, p['gamma1'][0], p['beta1'][0])
    value = (jnp.einsum('bnld,de->bnle', tgtn, p['w_value'])
             + p['b_value'][0]).astype(jnp.bfloat16)             # (B, N, L, d_model)
    wa_eff = (p['gamma_map'][0][:, None] * p['w_attn']).astype(jnp.bfloat16)

    param_list = [wa_eff,
                  p['w_out'].astype(jnp.bfloat16), p['b_out'],
                  p['gamma2'], p['beta2'],
                  p['w_ff1'].astype(jnp.bfloat16), p['b_ff1'],
                  p['w_ff2'].astype(jnp.bfloat16), p['b_ff2']]

    def _const_spec(arr):
        zeros = (0,) * arr.ndim
        return pl.BlockSpec(arr.shape, lambda b, q: zeros)

    in_specs = (
        [pl.BlockSpec((1, N, L, d_model), lambda b, q: (b, 0, 0, 0)),       # value
         pl.BlockSpec((1, q_tile, L, d_in), lambda b, q: (b, q, 0, 0)),     # src_norm
         pl.BlockSpec((1, N, q_tile, d_model), lambda b, q: (b, 0, q, 0))]  # tgt (residual)
        + [_const_spec(a) for a in param_list])

    out_spec = pl.BlockSpec((1, N, q_tile, d_model), lambda b, q: (b, 0, q, 0))

    # ---- VMEM budget: padded block sizes (double-buffered) + scratch + slabs ----
    block_items = ([((1, N, L, d_model), jnp.bfloat16),
                    ((1, q_tile, L, d_in), jnp.bfloat16),
                    ((1, N, q_tile, d_model), tgt.dtype),
                    ((1, N, q_tile, d_model), tgt.dtype)]
                   + [(a.shape, a.dtype) for a in param_list])
    block_bytes = sum(_padded_bytes(s, d) for s, d in block_items)
    scratch_bytes = _padded_bytes((N, q_tile, d_model), jnp.float32)
    compute_bytes = (3 * _padded_bytes((heads, q_tile, L), jnp.float32)
                     + 2 * _padded_bytes((N * q_tile, d_ff), jnp.float32))
    est = 2 * block_bytes + scratch_bytes + compute_bytes
    cap = (56 << 20) if phys_vmem <= (64 << 20) else (100 << 20)
    vmem_limit = int(min(cap, max(32 << 20, int(1.5 * est))))

    return pl.pallas_call(
        functools.partial(_encoder_layer_kernel,
                          heads=heads, d_k=d_k, q_tile=q_tile),
        out_shape=jax.ShapeDtypeStruct(tgt.shape, tgt.dtype),
        grid=(B, n_q),
        in_specs=in_specs,
        out_specs=out_spec,
        scratch_shapes=[pltpu.VMEM((N, q_tile, d_model), jnp.float32)],
        input_output_aliases={2: 0},   # carried activation reuses tgt's buffer
        compiler_params=pltpu.CompilerParams(
            dimension_semantics=("parallel", "parallel"),
            vmem_limit_bytes=vmem_limit),
    )(value, src_norm, tgt, *param_list)


def special_encoder(src, tgt, layer_params, *, heads, q_tile=None):
    """SpecialEncoder.forward: output = tgt; for layer in layers: output = layer(src, output)."""
    # Pair-feature LN statistics are layer independent -> normalize src ONCE
    # (f32 math, bf16 storage).  Per-layer gamma is folded into w_attn in the
    # layer wrapper; the beta term shifts all key logits equally and cancels
    # in the softmax, so it is dropped exactly.
    mu = jnp.mean(src, axis=-1, keepdims=True)
    var = jnp.mean(jnp.square(src - mu), axis=-1, keepdims=True)
    src_norm = ((src - mu) * jax.lax.rsqrt(var + _EPS)).astype(jnp.bfloat16)

    # TODO(synk): fuse the layer loop into one pallas_call (stacked params,
    # extra 'arbitrary' layer grid axis) so src_norm is read from HBM once.
    # TODO(synk): lane-dense (B, N, L*d_model) output reshape for d_model < 128
    # (masked-store avoidance) — verify store path in the bundle dump first.
    output = tgt
    for p in layer_params:
        output = _special_encoder_layer(src_norm, output, p,
                                        heads=heads, q_tile=q_tile)
    return output


# --------------------------- parameter init -------------------------------- #
def init_params(key, n_layer, d_in, d_model, d_ff, heads):
    layers = []
    for _ in range(n_layer):
        key, *ks = jax.random.split(key, 12)

        def dense(k, fan_in, shape):
            return jax.random.normal(k, shape, jnp.float32) / np.sqrt(fan_in)

        layers.append({
            'gamma_map': 1.0 + 0.1 * jax.random.normal(ks[0], (1, d_in), jnp.float32),
            'beta_map': 0.1 * jax.random.normal(ks[1], (1, d_in), jnp.float32),
            'w_attn': dense(ks[2], d_in, (d_in, heads)),
            'gamma1': 1.0 + 0.1 * jax.random.normal(ks[3], (1, d_model), jnp.float32),
            'beta1': 0.1 * jax.random.normal(ks[4], (1, d_model), jnp.float32),
            'w_value': dense(ks[5], d_model, (d_model, d_model)),
            'b_value': jnp.zeros((1, d_model), jnp.float32),
            'w_out': dense(ks[6], d_model, (d_model, d_model)),
            'b_out': jnp.zeros((1, d_model), jnp.float32),
            'gamma2': 1.0 + 0.1 * jax.random.normal(ks[7], (1, d_model), jnp.float32),
            'beta2': 0.1 * jax.random.normal(ks[8], (1, d_model), jnp.float32),
            'w_ff1': dense(ks[9], d_model, (d_model, d_ff)),
            'b_ff1': jnp.zeros((1, d_ff), jnp.float32),
            'w_ff2': dense(ks[10], d_ff, (d_ff, d_model)),
            'b_ff2': jnp.zeros((1, d_model), jnp.float32),
        })
    return layers


# ---------------------------- pure-JAX reference --------------------------- #
def _layer_ref(src, tgt, p, heads):
    hp = jax.lax.Precision.HIGHEST
    d_model = tgt.shape[-1]
    d_k = d_model // heads
    srcn = _layer_norm(src, p['gamma_map'][0], p['beta_map'][0])
    attn = _softmax_last(jnp.einsum('bqkd,dh->bhqk', srcn, p['w_attn'], precision=hp))
    tgtn = _layer_norm(tgt, p['gamma1'][0], p['beta1'][0])
    value = jnp.einsum('bnld,de->bnle', tgtn, p['w_value'], precision=hp) + p['b_value'][0]
    value = value.reshape(value.shape[:-1] + (heads, d_k))
    ctx = jnp.einsum('bhqk,bnkhd->bnqhd', attn, value, precision=hp)
    ctx = ctx.reshape(ctx.shape[:3] + (d_model,))
    ctx = jnp.einsum('bnld,de->bnle', ctx, p['w_out'], precision=hp) + p['b_out'][0]
    x = tgt + ctx
    xn = _layer_norm(x, p['gamma2'][0], p['beta2'][0])
    h1 = jax.nn.relu(jnp.einsum('bnld,df->bnlf', xn, p['w_ff1'], precision=hp) + p['b_ff1'][0])
    ff = jnp.einsum('bnlf,fd->bnld', h1, p['w_ff2'], precision=hp) + p['b_ff2'][0]
    return x + ff


def special_encoder_ref(src, tgt, layer_params, heads):
    out = tgt
    for p in layer_params:
        out = _layer_ref(src, out, p, heads)
    return out


if __name__ == "__main__":
    B, N, L = 2, 4, 16
    d_in, d_model, d_ff, heads, n_layer = 16, 32, 64, 4, 2
    q_tile = 8   # two query tiles per batch element -> exercises the (B, L/TQ) grid

    key = jax.random.PRNGKey(0)
    k_src, k_tgt, k_par = jax.random.split(key, 3)
    src = jax.random.normal(k_src, (B, L, L, d_in), jnp.float32)
    tgt = jax.random.normal(k_tgt, (B, N, L, d_model), jnp.float32)
    params = init_params(k_par, n_layer, d_in, d_model, d_ff, heads)

    run = jax.jit(functools.partial(special_encoder, heads=heads, q_tile=q_tile))
    out = jax.block_until_ready(run(src, tgt, params))

    # bf16 operands + approximate softmax reciprocal vs. f32 HIGHEST reference
    # -> loose (eval-mode) tolerance.
    ref = special_encoder_ref(src, tgt, params, heads)
    np.testing.assert_allclose(np.asarray(out), np.asarray(ref),
                               rtol=4e-2, atol=4e-2)
    print("KERNEL_OK")
</pallas_src>

<mosaic_0001>
module attributes {stable_mosaic.version = 11 : i64} {
  func.func @_encoder_layer_kernel(%arg0: i32, %arg1: i32, %arg2: memref<1x4x16x32xbf16, #tpu.memory_space<vmem>>, %arg3: memref<1x8x16x16xbf16, #tpu.memory_space<vmem>>, %arg4: memref<1x4x8x32xf32, #tpu.memory_space<vmem>>, %arg5: memref<16x4xbf16, #tpu.memory_space<vmem>>, %arg6: memref<32x32xbf16, #tpu.memory_space<vmem>>, %arg7: memref<1x32xf32, #tpu.memory_space<vmem>>, %arg8: memref<1x32xf32, #tpu.memory_space<vmem>>, %arg9: memref<1x32xf32, #tpu.memory_space<vmem>>, %arg10: memref<32x64xbf16, #tpu.memory_space<vmem>>, %arg11: memref<1x64xf32, #tpu.memory_space<vmem>>, %arg12: memref<64x32xbf16, #tpu.memory_space<vmem>>, %arg13: memref<1x32xf32, #tpu.memory_space<vmem>>, %arg14: memref<1x4x8x32xf32, #tpu.memory_space<vmem>>, %arg15: memref<4x8x32xf32, #tpu.memory_space<vmem>>) attributes {dimension_semantics = [#tpu.dimension_semantics<parallel>, #tpu.dimension_semantics<parallel>], iteration_bounds = array<i64: 2, 2>, scalar_prefetch = 0 : i64, scratch_operands = 1 : i64, tpu.core_type = #tpu.core_type<tc>, window_params = [{transform_indices = @transform_0, window_bounds = array<i64: 1, 4, 16, 32>}, {transform_indices = @transform_1, window_bounds = array<i64: 1, 8, 16, 16>}, {transform_indices = @transform_2, window_bounds = array<i64: 1, 4, 8, 32>}, {pipeline_mode = #tpu.pipeline_mode<synchronous>, transform_indices = @transform_3, window_bounds = array<i64: 16, 4>}, {pipeline_mode = #tpu.pipeline_mode<synchronous>, transform_indices = @transform_4, window_bounds = array<i64: 32, 32>}, {pipeline_mode = #tpu.pipeline_mode<synchronous>, transform_indices = @transform_5, window_bounds = array<i64: 1, 32>}, {pipeline_mode = #tpu.pipeline_mode<synchronous>, transform_indices = @transform_6, window_bounds = array<i64: 1, 32>}, {pipeline_mode = #tpu.pipeline_mode<synchronous>, transform_indices = @transform_7, window_bounds = array<i64: 1, 32>}, {pipeline_mode = #tpu.pipeline_mode<synchronous>, transform_indices = @transform_8, window_bounds = array<i64: 32, 64>}, {pipeline_mode = #tpu.pipeline_mode<synchronous>, transform_indices = @transform_9, window_bounds = array<i64: 1, 64>}, {pipeline_mode = #tpu.pipeline_mode<synchronous>, transform_indices = @transform_10, window_bounds = array<i64: 64, 32>}, {pipeline_mode = #tpu.pipeline_mode<synchronous>, transform_indices = @transform_11, window_bounds = array<i64: 1, 32>}, {transform_indices = @transform_12, window_bounds = array<i64: 1, 4, 8, 32>}]} {
    %c0 = arith.constant 0 : index
    %c0_0 = arith.constant 0 : index
    %c0_1 = arith.constant 0 : index
    %c0_2 = arith.constant 0 : index
    %0 = vector.load %arg3[%c0, %c0_0, %c0_1, %c0_2] : memref<1x8x16x16xbf16, #tpu.memory_space<vmem>>, vector<1x8x16x16xbf16>
    %1 = vector.shape_cast %0 : vector<1x8x16x16xbf16> to vector<8x16x16xbf16>
    %c0_3 = arith.constant 0 : index
    %c0_4 = arith.constant 0 : index
    %2 = vector.load %arg5[%c0_3, %c0_4] : memref<16x4xbf16, #tpu.memory_space<vmem>>, vector<16x4xbf16>
    "tpu.trace_start"() <{level = 10 : i32, message = "qkd,dh->hqk"}> : () -> ()
    %cst = arith.constant dense<0.000000e+00> : vector<4x8x16xf32>
    %3 = tpu.matmul %2, %1, %cst {dimension_numbers = #tpu.dot_dimension_numbers<[0], [2], [1], [0, 1], [0, 1, 1, 0, 1, 1], [], []>} : vector<16x4xbf16>, vector<8x16x16xbf16>, vector<4x8x16xf32> -> vector<4x8x16xf32>
    "tpu.trace_stop"() : () -> ()
    %cst_5 = arith.constant dense<0xFF800000> : vector<4x8xf32>
    %4 = vector.multi_reduction <maximumf>, %3, %cst_5 [2] : vector<4x8x16xf32> to vector<4x8xf32>
    %5 = vector.shape_cast %4 : vector<4x8xf32> to vector<4x8x1xf32>
    %6 = vector.broadcast %5 : vector<4x8x1xf32> to vector<4x8x16xf32>
    %7 = arith.subf %3, %6 : vector<4x8x16xf32>
    %8 = math.exp %7 : vector<4x8x16xf32>
    %cst_6 = arith.constant dense<0.000000e+00> : vector<4x8xf32>
    %9 = vector.multi_reduction <add>, %8, %cst_6 [2] : vector<4x8x16xf32> to vector<4x8xf32>
    %10 = vector.shape_cast %9 : vector<4x8xf32> to vector<4x8x1xf32>
    %11 = tpu.reciprocal %10 {approx = true} : vector<4x8x1xf32> -> vector<4x8x1xf32>
    %12 = vector.broadcast %11 : vector<4x8x1xf32> to vector<4x8x16xf32>
    %13 = arith.mulf %8, %12 : vector<4x8x16xf32>
    %14 = arith.truncf %13 : vector<4x8x16xf32> to vector<4x8x16xbf16>
    %15 = vector.extract_strided_slice %14 {offsets = [0, 0, 0], sizes = [1, 8, 16], strides = [1, 1, 1]} : vector<4x8x16xbf16> to vector<1x8x16xbf16>
    %16 = vector.shape_cast %15 : vector<1x8x16xbf16> to vector<8x16xbf16>
    %c0_7 = arith.constant 0 : index
    %c0_8 = arith.constant 0 : index
    %c0_9 = arith.constant 0 : index
    %c0_10 = arith.constant 0 : index
    %17 = vector.load %arg2[%c0_7, %c0_8, %c0_9, %c0_10] : memref<1x4x16x32xbf16, #tpu.memory_space<vmem>>, vector<1x4x16x8xbf16>
    %18 = vector.shape_cast %17 : vector<1x4x16x8xbf16> to vector<4x16x8xbf16>
    "tpu.trace_start"() <{level = 10 : i32, message = "qk,nkd->nqd"}> : () -> ()
    %cst_11 = arith.constant dense<0.000000e+00> : vector<4x8x8xf32>
    %19 = tpu.matmul %18, %16, %cst_11 {dimension_numbers = #tpu.dot_dimension_numbers<[1], [1], [0, 2], [0], [0, 0, 0, 2, 1, 0], [], []>} : vector<4x16x8xbf16>, vector<8x16xbf16>, vector<4x8x8xf32> -> vector<4x8x8xf32>
    %20 = tpu.transpose %19, [0, 2, 1] : vector<4x8x8xf32> -> vector<4x8x8xf32>
    "tpu.trace_stop"() : () -> ()
    %c0_12 = arith.constant 0 : index
    %c0_13 = arith.constant 0 : index
    %c0_14 = arith.constant 0 : index
    %21 = vector.load %arg15[%c0_12, %c0_13, %c0_14] : memref<4x8x32xf32, #tpu.memory_space<vmem>>, vector<4x8x8xf32>
    tpu.vector_store %arg15[%c0_12, %c0_13, %c0_14], %20 {strides = array<i32>} : memref<4x8x32xf32, #tpu.memory_space<vmem>>, vector<4x8x8xf32>,
    %22 = vector.extract_strided_slice %14 {offsets = [1, 0, 0], sizes = [1, 8, 16], strides = [1, 1, 1]} : vector<4x8x16xbf16> to vector<1x8x16xbf16>
    %23 = vector.shape_cast %22 : vector<1x8x16xbf16> to vector<8x16xbf16>
    %c0_15 = arith.constant 0 : index
    %c0_16 = arith.constant 0 : index
    %c0_17 = arith.constant 0 : index
    %c8 = arith.constant 8 : index
    %24 = vector.load %arg2[%c0_15, %c0_16, %c0_17, %c8] : memref<1x4x16x32xbf16, #tpu.memory_space<vmem>>, vector<1x4x16x8xbf16>
    %25 = vector.shape_cast %24 : vector<1x4x16x8xbf16> to vector<4x16x8xbf16>
    "tpu.trace_start"() <{level = 10 : i32, message = "qk,nkd->nqd"}> : () -> ()
    %cst_18 = arith.constant dense<0.000000e+00> : vector<4x8x8xf32>
    %26 = tpu.matmul %25, %23, %cst_18 {dimension_numbers = #tpu.dot_dimension_numbers<[1], [1], [0, 2], [0], [0, 0, 0, 2, 1, 0], [], []>} : vector<4x16x8xbf16>, vector<8x16xbf16>, vector<4x8x8xf32> -> vector<4x8x8xf32>
    %27 = tpu.transpose %26, [0, 2, 1] : vector<4x8x8xf32> -> vector<4x8x8xf32>
    "tpu.trace_stop"() : () -> ()
    %c0_19 = arith.constant 0 : index
    %c0_20 = arith.constant 0 : index
    %c8_21 = arith.constant 8 : index
    %28 = vector.load %arg15[%c0_19, %c0_20, %c8_21] : memref<4x8x32xf32, #tpu.memory_space<vmem>>, vector<4x8x8xf32>
    tpu.vector_store %arg15[%c0_19, %c0_20, %c8_21], %27 {strides = array<i32>} : memref<4x8x32xf32, #tpu.memory_space<vmem>>, vector<4x8x8xf32>,
    %29 = vector.extract_strided_slice %14 {offsets = [2, 0, 0], sizes = [1, 8, 16], strides = [1, 1, 1]} : vector<4x8x16xbf16> to vector<1x8x16xbf16>
    %30 = vector.shape_cast %29 : vector<1x8x16xbf16> to vector<8x16xbf16>
    %c0_22 = arith.constant 0 : index
    %c0_23 = arith.constant 0 : index
    %c0_24 = arith.constant 0 : index
    %c16 = arith.constant 16 : index
    %31 = vector.load %arg2[%c0_22, %c0_23, %c0_24, %c16] : memref<1x4x16x32xbf16, #tpu.memory_space<vmem>>, vector<1x4x16x8xbf16>
    %32 = vector.shape_cast %31 : vector<1x4x16x8xbf16> to vector<4x16x8xbf16>
    "tpu.trace_start"() <{level = 10 : i32, message = "qk,nkd->nqd"}> : () -> ()
    %cst_25 = arith.constant dense<0.000000e+00> : vector<4x8x8xf32>
    %33 = tpu.matmul %32, %30, %cst_25 {dimension_numbers = #tpu.dot_dimension_numbers<[1], [1], [0, 2], [0], [0, 0, 0, 2, 1, 0], [], []>} : vector<4x16x8xbf16>, vector<8x16xbf16>, vector<4x8x8xf32> -> vector<4x8x8xf32>
    %34 = tpu.transpose %33, [0, 2, 1] : vector<4x8x8xf32> -> vector<4x8x8xf32>
    "tpu.trace_stop"() : () -> ()
    %c0_26 = arith.constant 0 : index
    %c0_27 = arith.constant 0 : index
    %c16_28 = arith.constant 16 : index
    %35 = vector.load %arg15[%c0_26, %c0_27, %c16_28] : memref<4x8x32xf32, #tpu.memory_space<vmem>>, vector<4x8x8xf32>
    tpu.vector_store %arg15[%c0_26, %c0_27, %c16_28], %34 {strides = array<i32>} : memref<4x8x32xf32, #tpu.memory_space<vmem>>, vector<4x8x8xf32>,
    %36 = vector.extract_strided_slice %14 {offsets = [3, 0, 0], sizes = [1, 8, 16], strides = [1, 1, 1]} : vector<4x8x16xbf16> to vector<1x8x16xbf16>
    %37 = vector.shape_cast %36 : vector<1x8x16xbf16> to vector<8x16xbf16>
    %c0_29 = arith.constant 0 : index
    %c0_30 = arith.constant 0 : index
    %c0_31 = arith.constant 0 : index
    %c24 = arith.constant 24 : index
    %38 = vector.load %arg2[%c0_29, %c0_30, %c0_31, %c24] : memref<1x4x16x32xbf16, #tpu.memory_space<vmem>>, vector<1x4x16x8xbf16>
    %39 = vector.shape_cast %38 : vector<1x4x16x8xbf16> to vector<4x16x8xbf16>
    "tpu.trace_start"() <{level = 10 : i32, message = "qk,nkd->nqd"}> : () -> ()
    %cst_32 = arith.constant dense<0.000000e+00> : vector<4x8x8xf32>
    %40 = tpu.matmul %39, %37, %cst_32 {dimension_numbers = #tpu.dot_dimension_numbers<[1], [1], [0, 2], [0], [0, 0, 0, 2, 1, 0], [], []>} : vector<4x16x8xbf16>, vector<8x16xbf16>, vector<4x8x8xf32> -> vector<4x8x8xf32>
    %41 = tpu.transpose %40, [0, 2, 1] : vector<4x8x8xf32> -> vector<4x8x8xf32>
    "tpu.trace_stop"() : () -> ()
    %c0_33 = arith.constant 0 : index
    %c0_34 = arith.constant 0 : index
    %c24_35 = arith.constant 24 : index
    %42 = vector.load %arg15[%c0_33, %c0_34, %c24_35] : memref<4x8x32xf32, #tpu.memory_space<vmem>>, vector<4x8x8xf32>
    tpu.vector_store %arg15[%c0_33, %c0_34, %c24_35], %41 {strides = array<i32>} : memref<4x8x32xf32, #tpu.memory_space<vmem>>, vector<4x8x8xf32>,
    %c0_36 = arith.constant 0 : index
    %c0_37 = arith.constant 0 : index
    %c0_38 = arith.constant 0 : index
    %c0_39 = arith.constant 0 : index
    %43 = vector.load %arg4[%c0_36, %c0_37, %c0_38, %c0_39] : memref<1x4x8x32xf32, #tpu.memory_space<vmem>>, vector<1x4x8x32xf32>
    %44 = vector.shape_cast %43 : vector<1x4x8x32xf32> to vector<4x8x32xf32>
    %c0_40 = arith.constant 0 : index
    %c0_41 = arith.constant 0 : index
    %c0_42 = arith.constant 0 : index
    %45 = vector.load %arg15[%c0_40, %c0_41, %c0_42] : memref<4x8x32xf32, #tpu.memory_space<vmem>>, vector<4x8x32xf32>
    %46 = vector.shape_cast %45 : vector<4x8x32xf32> to vector<32x32xf32>
    %47 = arith.truncf %46 : vector<32x32xf32> to vector<32x32xbf16>
    %c0_43 = arith.constant 0 : index
    %c0_44 = arith.constant 0 : index
    %48 = vector.load %arg6[%c0_43, %c0_44] : memref<32x32xbf16, #tpu.memory_space<vmem>>, vector<32x32xbf16>
    %cst_45 = arith.constant dense<0.000000e+00> : vector<32x32xf32>
    %49 = tpu.matmul %47, %48, %cst_45 {dimension_numbers = #tpu.dot_dimension_numbers<[1], [0], [0], [1], [0, 0, 1, 1], [], []>} : vector<32x32xbf16>, vector<32x32xbf16>, vector<32x32xf32> -> vector<32x32xf32>
    %c0_46 = arith.constant 0 : index
    %c0_47 = arith.constant 0 : index
    %50 = vector.load %arg7[%c0_46, %c0_47] : memref<1x32xf32, #tpu.memory_space<vmem>>, vector<1x32xf32>
    %51 = vector.broadcast %50 : vector<1x32xf32> to vector<32x32xf32>
    %52 = arith.addf %49, %51 : vector<32x32xf32>
    %53 = vector.shape_cast %44 : vector<4x8x32xf32> to vector<32x32xf32>
    %54 = arith.addf %53, %52 : vector<32x32xf32>
    %c0_48 = arith.constant 0 : index
    %c0_49 = arith.constant 0 : index
    %55 = vector.load %arg8[%c0_48, %c0_49] : memref<1x32xf32, #tpu.memory_space<vmem>>, vector<1x32xf32>
    %c0_50 = arith.constant 0 : index
    %c0_51 = arith.constant 0 : index
    %56 = vector.load %arg9[%c0_50, %c0_51] : memref<1x32xf32, #tpu.memory_space<vmem>>, vector<1x32xf32>
    %cst_52 = arith.constant dense<0.000000e+00> : vector<32xf32>
    %57 = vector.multi_reduction <add>, %54, %cst_52 [1] : vector<32x32xf32> to vector<32xf32>
    %58 = vector.shape_cast %57 : vector<32xf32> to vector<32x1xf32>
    %cst_53 = arith.constant 3.200000e+01 : f32
    %59 = vector.broadcast %cst_53 : f32 to vector<32x1xf32>
    %60 = arith.divf %58, %59 : vector<32x1xf32>
    %61 = vector.broadcast %60 : vector<32x1xf32> to vector<32x32xf32>
    %62 = arith.subf %54, %61 : vector<32x32xf32>
    %63 = arith.mulf %62, %62 : vector<32x32xf32>
    %cst_54 = arith.constant dense<0.000000e+00> : vector<32xf32>
    %64 = vector.multi_reduction <add>, %63, %cst_54 [1] : vector<32x32xf32> to vector<32xf32>
    %65 = vector.shape_cast %64 : vector<32xf32> to vector<32x1xf32>
    %cst_55 = arith.constant 3.200000e+01 : f32
    %66 = vector.broadcast %cst_55 : f32 to vector<32x1xf32>
    %67 = arith.divf %65, %66 : vector<32x1xf32>
    %68 = vector.broadcast %60 : vector<32x1xf32> to vector<32x32xf32>
    %69 = arith.subf %54, %68 : vector<32x32xf32>
    %cst_56 = arith.constant 9.99999974E-6 : f32
    %70 = vector.broadcast %cst_56 : f32 to vector<32x1xf32>
    %71 = arith.addf %67, %70 : vector<32x1xf32>
    %72 = math.rsqrt %71 : vector<32x1xf32>
    %73 = vector.broadcast %72 : vector<32x1xf32> to vector<32x32xf32>
    %74 = arith.mulf %69, %73 : vector<32x32xf32>
    %75 = vector.broadcast %55 : vector<1x32xf32> to vector<32x32xf32>
    %76 = arith.mulf %74, %75 : vector<32x32xf32>
    %77 = vector.broadcast %56 : vector<1x32xf32> to vector<32x32xf32>
    %78 = arith.addf %76, %77 : vector<32x32xf32>
    %79 = arith.truncf %78 : vector<32x32xf32> to vector<32x32xbf16>
    %c0_57 = arith.constant 0 : index
    %c0_58 = arith.constant 0 : index
    %80 = vector.load %arg10[%c0_57, %c0_58] : memref<32x64xbf16, #tpu.memory_space<vmem>>, vector<32x64xbf16>
    %cst_59 = arith.constant dense<0.000000e+00> : vector<32x64xf32>
    %81 = tpu.matmul %79, %80, %cst_59 {dimension_numbers = #tpu.dot_dimension_numbers<[1], [0], [0], [1], [0, 0, 1, 1], [], []>} : vector<32x32xbf16>, vector<32x64xbf16>, vector<32x64xf32> -> vector<32x64xf32>
    %c0_60 = arith.constant 0 : index
    %c0_61 = arith.constant 0 : index
    %82 = vector.load %arg11[%c0_60, %c0_61] : memref<1x64xf32, #tpu.memory_space<vmem>>, vector<1x64xf32>
    %83 = vector.broadcast %82 : vector<1x64xf32> to vector<32x64xf32>
    %84 = arith.addf %81, %83 : vector<32x64xf32>
    %cst_62 = arith.constant 0.000000e+00 : f32
    %85 = vector.broadcast %cst_62 : f32 to vector<32x64xf32>
    %86 = arith.maximumf %84, %85 : vector<32x64xf32>
    %87 = arith.truncf %86 : vector<32x64xf32> to vector<32x64xbf16>
    %c0_63 = arith.constant 0 : index
    %c0_64 = arith.constant 0 : index
    %88 = vector.load %arg12[%c0_63, %c0_64] : memref<64x32xbf16, #tpu.memory_space<vmem>>, vector<64x32xbf16>
    %cst_65 = arith.constant dense<0.000000e+00> : vector<32x32xf32>
    %89 = tpu.matmul %87, %88, %cst_65 {dimension_numbers = #tpu.dot_dimension_numbers<[1], [0], [0], [1], [0, 0, 1, 1], [], []>} : vector<32x64xbf16>, vector<64x32xbf16>, vector<32x32xf32> -> vector<32x32xf32>
    %c0_66 = arith.constant 0 : index
    %c0_67 = arith.constant 0 : index
    %90 = vector.load %arg13[%c0_66, %c0_67] : memref<1x32xf32, #tpu.memory_space<vmem>>, vector<1x32xf32>
    %91 = vector.broadcast %90 : vector<1x32xf32> to vector<32x32xf32>
    %92 = arith.addf %89, %91 : vector<32x32xf32>
    %93 = arith.addf %54, %92 : vector<32x32xf32>
    %94 = vector.shape_cast %93 : vector<32x32xf32> to vector<4x8x32xf32>
    %c0_68 = arith.constant 0 : index
    %c0_69 = arith.constant 0 : index
    %c0_70 = arith.constant 0 : index
    %c0_71 = arith.constant 0 : index
    %95 = vector.load %arg14[%c0_68, %c0_69, %c0_70, %c0_71] : memref<1x4x8x32xf32, #tpu.memory_space<vmem>>, vector<1x4x8x32xf32>
    %96 = vector.shape_cast %95 : vector<1x4x8x32xf32> to vector<4x8x32xf32>
    %97 = vector.shape_cast %94 : vector<4x8x32xf32> to vector<1x4x8x32xf32>
    tpu.vector_store %arg14[%c0_68, %c0_69, %c0_70, %c0_71], %97 {strides = array<i32>} : memref<1x4x8x32xf32, #tpu.memory_space<vmem>>, vector<1x4x8x32xf32>,
    return
  }
  func.func @transform_0(%arg0: i32, %arg1: i32) -> (i32, i32, i32, i32) {
    %c0_i32 = arith.constant 0 : i32
    %c0_i32_0 = arith.constant 0 : i32
    %c0_i32_1 = arith.constant 0 : i32
    %c0_i32_2 = arith.constant 0 : i32
    return %arg0, %c0_i32, %c0_i32_0, %c0_i32_1 : i32, i32, i32, i32
  }
  func.func @transform_1(%arg0: i32, %arg1: i32) -> (i32, i32, i32, i32) {
    %c0_i32 = arith.constant 0 : i32
    %c0_i32_0 = arith.constant 0 : i32
    %c0_i32_1 = arith.constant 0 : i32
    return %arg0, %arg1, %c0_i32, %c0_i32_0 : i32, i32, i32, i32
  }
  func.func @transform_2(%arg0: i32, %arg1: i32) -> (i32, i32, i32, i32) {
    %c0_i32 = arith.constant 0 : i32
    %c0_i32_0 = arith.constant 0 : i32
    %c0_i32_1 = arith.constant 0 : i32
    return %arg0, %c0_i32, %arg1, %c0_i32_0 : i32, i32, i32, i32
  }
  func.func @transform_3(%arg0: i32, %arg1: i32) -> (i32, i32) {
    %c0_i32 = arith.constant 0 : i32
    %c0_i32_0 = arith.constant 0 : i32
    %c0_i32_1 = arith.constant 0 : i32
    return %c0_i32, %c0_i32_0 : i32, i32
  }
  func.func @transform_4(%arg0: i32, %arg1: i32) -> (i32, i32) {
    %c0_i32 = arith.constant 0 : i32
    %c0_i32_0 = arith.constant 0 : i32
    %c0_i32_1 = arith.constant 0 : i32
    return %c0_i32, %c0_i32_0 : i32, i32
  }
  func.func @transform_5(%arg0: i32, %arg1: i32) -> (i32, i32) {
    %c0_i32 = arith.constant 0 : i32
    %c0_i32_0 = arith.constant 0 : i32
    %c0_i32_1 = arith.constant 0 : i32
    return %c0_i32, %c0_i32_0 : i32, i32
  }
  func.func @transform_6(%arg0: i32, %arg1: i32) -> (i32, i32) {
    %c0_i32 = arith.constant 0 : i32
    %c0_i32_0 = arith.constant 0 : i32
    %c0_i32_1 = arith.constant 0 : i32
    return %c0_i32, %c0_i32_0 : i32, i32
  }
  func.func @transform_7(%arg0: i32, %arg1: i32) -> (i32, i32) {
    %c0_i32 = arith.constant 0 : i32
    %c0_i32_0 = arith.constant 0 : i32
    %c0_i32_1 = arith.constant 0 : i32
    return %c0_i32, %c0_i32_0 : i32, i32
  }
  func.func @transform_8(%arg0: i32, %arg1: i32) -> (i32, i32) {
    %c0_i32 = arith.constant 0 : i32
    %c0_i32_0 = arith.constant 0 : i32
    %c0_i32_1 = arith.constant 0 : i32
    return %c0_i32, %c0_i32_0 : i32, i32
  }
  func.func @transform_9(%arg0: i32, %arg1: i32) -> (i32, i32) {
    %c0_i32 = arith.constant 0 : i32
    %c0_i32_0 = arith.constant 0 : i32
    %c0_i32_1 = arith.constant 0 : i32
    return %c0_i32, %c0_i32_0 : i32, i32
  }
  func.func @transform_10(%arg0: i32, %arg1: i32) -> (i32, i32) {
    %c0_i32 = arith.constant 0 : i32
    %c0_i32_0 = arith.constant 0 : i32
    %c0_i32_1 = arith.constant 0 : i32
    return %c0_i32, %c0_i32_0 : i32, i32
  }
  func.func @transform_11(%arg0: i32, %arg1: i32) -> (i32, i32) {
    %c0_i32 = arith.constant 0 : i32
    %c0_i32_0 = arith.constant 0 : i32
    %c0_i32_1 = arith.constant 0 : i32
    return %c0_i32, %c0_i32_0 : i32, i32
  }
  func.func @transform_12(%arg0: i32, %arg1: i32) -> (i32, i32, i32, i32) {
    %c0_i32 = arith.constant 0 : i32
    %c0_i32_0 = arith.constant 0 : i32
    %c0_i32_1 = arith.constant 0 : i32
    return %arg0, %c0_i32, %arg1, %c0_i32_0 : i32, i32, i32, i32
  }
}

module attributes {stable_mosaic.version = 11 : i64} {
  func.func @_encoder_layer_kernel(%arg0: i32, %arg1: i32, %arg2: memref<1x4x16x32xbf16, #tpu.memory_space<vmem>>, %arg3: memref<1x8x16x16xbf16, #tpu.memory_space<vmem>>, %arg4: memref<1x4x8x32xf32, #tpu.memory_space<vmem>>, %arg5: memref<16x4xbf16, #tpu.memory_space<vmem>>, %arg6: memref<32x32xbf16, #tpu.memory_space<vmem>>, %arg7: memref<1x32xf32, #tpu.memory_space<vmem>>, %arg8: memref<1x32xf32, #tpu.memory_space<vmem>>, %arg9: memref<1x32xf32, #tpu.memory_space<vmem>>, %arg10: memref<32x64xbf16, #tpu.memory_space<vmem>>, %arg11: memref<1x64xf32, #tpu.memory_space<vmem>>, %arg12: memref<64x32xbf16, #tpu.memory_space<vmem>>, %arg13: memref<1x32xf32, #tpu.memory_space<vmem>>, %arg14: memref<1x4x8x32xf32, #tpu.memory_space<vmem>>, %arg15: memref<4x8x32xf32, #tpu.memory_space<vmem>>) attributes {dimension_semantics = [#tpu.dimension_semantics<parallel>, #tpu.dimension_semantics<parallel>], iteration_bounds = array<i64: 2, 2>, scalar_prefetch = 0 : i64, scratch_operands = 1 : i64, tpu.core_type = #tpu.core_type<tc>, window_params = [{transform_indices = @transform_0, window_bounds = array<i64: 1, 4, 16, 32>}, {transform_indices = @transform_1, window_bounds = array<i64: 1, 8, 16, 16>}, {transform_indices = @transform_2, window_bounds = array<i64: 1, 4, 8, 32>}, {pipeline_mode = #tpu.pipeline_mode<synchronous>, transform_indices = @transform_3, window_bounds = array<i64: 16, 4>}, {pipeline_mode = #tpu.pipeline_mode<synchronous>, transform_indices = @transform_4, window_bounds = array<i64: 32, 32>}, {pipeline_mode = #tpu.pipeline_mode<synchronous>, transform_indices = @transform_5, window_bounds = array<i64: 1, 32>}, {pipeline_mode = #tpu.pipeline_mode<synchronous>, transform_indices = @transform_6, window_bounds = array<i64: 1, 32>}, {pipeline_mode = #tpu.pipeline_mode<synchronous>, transform_indices = @transform_7, window_bounds = array<i64: 1, 32>}, {pipeline_mode = #tpu.pipeline_mode<synchronous>, transform_indices = @transform_8, window_bounds = array<i64: 32, 64>}, {pipeline_mode = #tpu.pipeline_mode<synchronous>, transform_indices = @transform_9, window_bounds = array<i64: 1, 64>}, {pipeline_mode = #tpu.pipeline_mode<synchronous>, transform_indices = @transform_10, window_bounds = array<i64: 64, 32>}, {pipeline_mode = #tpu.pipeline_mode<synchronous>, transform_indices = @transform_11, window_bounds = array<i64: 1, 32>}, {transform_indices = @transform_12, window_bounds = array<i64: 1, 4, 8, 32>}]} {
    %c0 = arith.constant 0 : index
    %c0_0 = arith.constant 0 : index
    %c0_1 = arith.constant 0 : index
    %c0_2 = arith.constant 0 : index
    %0 = vector.load %arg3[%c0, %c0_0, %c0_1, %c0_2] : memref<1x8x16x16xbf16, #tpu.memory_space<vmem>>, vector<1x8x16x16xbf16>
    %1 = vector.shape_cast %0 : vector<1x8x16x16xbf16> to vector<8x16x16xbf16>
    %c0_3 = arith.constant 0 : index
    %c0_4 = arith.constant 0 : index
    %2 = vector.load %arg5[%c0_3, %c0_4] : memref<16x4xbf16, #tpu.memory_space<vmem>>, vector<16x4xbf16>
    "tpu.trace_start"() <{level = 10 : i32, message = "qkd,dh->hqk"}> : () -> ()
    %cst = arith.constant dense<0.000000e+00> : vector<4x8x16xf32>
    %3 = tpu.matmul %2, %1, %cst {dimension_numbers = #tpu.dot_dimension_numbers<[0], [2], [1], [0, 1], [0, 1, 1, 0, 1, 1], [], []>} : vector<16x4xbf16>, vector<8x16x16xbf16>, vector<4x8x16xf32> -> vector<4x8x16xf32>
    "tpu.trace_stop"() : () -> ()
    %cst_5 = arith.constant dense<0xFF800000> : vector<4x8xf32>
    %4 = vector.multi_reduction <maximumf>, %3, %cst_5 [2] : vector<4x8x16xf32> to vector<4x8xf32>
    %5 = vector.shape_cast %4 : vector<4x8xf32> to vector<4x8x1xf32>
    %6 = vector.broadcast %5 : vector<4x8x1xf32> to vector<4x8x16xf32>
    %7 = arith.subf %3, %6 : vector<4x8x16xf32>
    %8 = math.exp %7 : vector<4x8x16xf32>
    %cst_6 = arith.constant dense<0.000000e+00> : vector<4x8xf32>
    %9 = vector.multi_reduction <add>, %8, %cst_6 [2] : vector<4x8x16xf32> to vector<4x8xf32>
    %10 = vector.shape_cast %9 : vector<4x8xf32> to vector<4x8x1xf32>
    %11 = tpu.reciprocal %10 {approx = true} : vector<4x8x1xf32> -> vector<4x8x1xf32>
    %12 = vector.broadcast %11 : vector<4x8x1xf32> to vector<4x8x16xf32>
    %13 = arith.mulf %8, %12 : vector<4x8x16xf32>
    %14 = arith.truncf %13 : vector<4x8x16xf32> to vector<4x8x16xbf16>
    %15 = vector.extract_strided_slice %14 {offsets = [0, 0, 0], sizes = [1, 8, 16], strides = [1, 1, 1]} : vector<4x8x16xbf16> to vector<1x8x16xbf16>
    %16 = vector.shape_cast %15 : vector<1x8x16xbf16> to vector<8x16xbf16>
    %c0_7 = arith.constant 0 : index
    %c0_8 = arith.constant 0 : index
    %c0_9 = arith.constant 0 : index
    %c0_10 = arith.constant 0 : index
    %17 = vector.load %arg2[%c0_7, %c0_8, %c0_9, %c0_10] : memref<1x4x16x32xbf16, #tpu.memory_space<vmem>>, vector<1x4x16x8xbf16>
    %18 = vector.shape_cast %17 : vector<1x4x16x8xbf16> to vector<4x16x8xbf16>
    "tpu.trace_start"() <{level = 10 : i32, message = "qk,nkd->nqd"}> : () -> ()
    %cst_11 = arith.constant dense<0.000000e+00> : vector<4x8x8xf32>
    %19 = tpu.matmul %18, %16, %cst_11 {dimension_numbers = #tpu.dot_dimension_numbers<[1], [1], [0, 2], [0], [0, 0, 0, 2, 1, 0], [], []>} : vector<4x16x8xbf16>, vector<8x16xbf16>, vector<4x8x8xf32> -> vector<4x8x8xf32>
    %20 = tpu.transpose %19, [0, 2, 1] : vector<4x8x8xf32> -> vector<4x8x8xf32>
    "tpu.trace_stop"() : () -> ()
    %c0_12 = arith.constant 0 : index
    %c0_13 = arith.constant 0 : index
    %c0_14 = arith.constant 0 : index
    %21 = vector.load %arg15[%c0_12, %c0_13, %c0_14] : memref<4x8x32xf32, #tpu.memory_space<vmem>>, vector<4x8x8xf32>
    tpu.vector_store %arg15[%c0_12, %c0_13, %c0_14], %20 {strides = array<i32>} : memref<4x8x32xf32, #tpu.memory_space<vmem>>, vector<4x8x8xf32>,
    %22 = vector.extract_strided_slice %14 {offsets = [1, 0, 0], sizes = [1, 8, 16], strides = [1, 1, 1]} : vector<4x8x16xbf16> to vector<1x8x16xbf16>
    %23 = vector.shape_cast %22 : vector<1x8x16xbf16> to vector<8x16xbf16>
    %c0_15 = arith.constant 0 : index
    %c0_16 = arith.constant 0 : index
    %c0_17 = arith.constant 0 : index
    %c8 = arith.constant 8 : index
    %24 = vector.load %arg2[%c0_15, %c0_16, %c0_17, %c8] : memref<1x4x16x32xbf16, #tpu.memory_space<vmem>>, vector<1x4x16x8xbf16>
    %25 = vector.shape_cast %24 : vector<1x4x16x8xbf16> to vector<4x16x8xbf16>
    "tpu.trace_start"() <{level = 10 : i32, message = "qk,nkd->nqd"}> : () -> ()
    %cst_18 = arith.constant dense<0.000000e+00> : vector<4x8x8xf32>
    %26 = tpu.matmul %25, %23, %cst_18 {dimension_numbers = #tpu.dot_dimension_numbers<[1], [1], [0, 2], [0], [0, 0, 0, 2, 1, 0], [], []>} : vector<4x16x8xbf16>, vector<8x16xbf16>, vector<4x8x8xf32> -> vector<4x8x8xf32>
    %27 = tpu.transpose %26, [0, 2, 1] : vector<4x8x8xf32> -> vector<4x8x8xf32>
    "tpu.trace_stop"() : () -> ()
    %c0_19 = arith.constant 0 : index
    %c0_20 = arith.constant 0 : index
    %c8_21 = arith.constant 8 : index
    %28 = vector.load %arg15[%c0_19, %c0_20, %c8_21] : memref<4x8x32xf32, #tpu.memory_space<vmem>>, vector<4x8x8xf32>
    tpu.vector_store %arg15[%c0_19, %c0_20, %c8_21], %27 {strides = array<i32>} : memref<4x8x32xf32, #tpu.memory_space<vmem>>, vector<4x8x8xf32>,
    %29 = vector.extract_strided_slice %14 {offsets = [2, 0, 0], sizes = [1, 8, 16], strides = [1, 1, 1]} : vector<4x8x16xbf16> to vector<1x8x16xbf16>
    %30 = vector.shape_cast %29 : vector<1x8x16xbf16> to vector<8x16xbf16>
    %c0_22 = arith.constant 0 : index
    %c0_23 = arith.constant 0 : index
    %c0_24 = arith.constant 0 : index
    %c16 = arith.constant 16 : index
    %31 = vector.load %arg2[%c0_22, %c0_23, %c0_24, %c16] : memref<1x4x16x32xbf16, #tpu.memory_space<vmem>>, vector<1x4x16x8xbf16>
    %32 = vector.shape_cast %31 : vector<1x4x16x8xbf16> to vector<4x16x8xbf16>
    "tpu.trace_start"() <{level = 10 : i32, message = "qk,nkd->nqd"}> : () -> ()
    %cst_25 = arith.constant dense<0.000000e+00> : vector<4x8x8xf32>
    %33 = tpu.matmul %32, %30, %cst_25 {dimension_numbers = #tpu.dot_dimension_numbers<[1], [1], [0, 2], [0], [0, 0, 0, 2, 1, 0], [], []>} : vector<4x16x8xbf16>, vector<8x16xbf16>, vector<4x8x8xf32> -> vector<4x8x8xf32>
    %34 = tpu.transpose %33, [0, 2, 1] : vector<4x8x8xf32> -> vector<4x8x8xf32>
    "tpu.trace_stop"() : () -> ()
    %c0_26 = arith.constant 0 : index
    %c0_27 = arith.constant 0 : index
    %c16_28 = arith.constant 16 : index
    %35 = vector.load %arg15[%c0_26, %c0_27, %c16_28] : memref<4x8x32xf32, #tpu.memory_space<vmem>>, vector<4x8x8xf32>
    tpu.vector_store %arg15[%c0_26, %c0_27, %c16_28], %34 {strides = array<i32>} : memref<4x8x32xf32, #tpu.memory_space<vmem>>, vector<4x8x8xf32>,
    %36 = vector.extract_strided_slice %14 {offsets = [3, 0, 0], sizes = [1, 8, 16], strides = [1, 1, 1]} : vector<4x8x16xbf16> to vector<1x8x16xbf16>
    %37 = vector.shape_cast %36 : vector<1x8x16xbf16> to vector<8x16xbf16>
    %c0_29 = arith.constant 0 : index
    %c0_30 = arith.constant 0 : index
    %c0_31 = arith.constant 0 : index
    %c24 = arith.constant 24 : index
    %38 = vector.load %arg2[%c0_29, %c0_30, %c0_31, %c24] : memref<1x4x16x32xbf16, #tpu.memory_space<vmem>>, vector<1x4x16x8xbf16>
    %39 = vector.shape_cast %38 : vector<1x4x16x8xbf16> to vector<4x16x8xbf16>
    "tpu.trace_start"() <{level = 10 : i32, message = "qk,nkd->nqd"}> : () -> ()
    %cst_32 = arith.constant dense<0.000000e+00> : vector<4x8x8xf32>
    %40 = tpu.matmul %39, %37, %cst_32 {dimension_numbers = #tpu.dot_dimension_numbers<[1], [1], [0, 2], [0], [0, 0, 0, 2, 1, 0], [], []>} : vector<4x16x8xbf16>, vector<8x16xbf16>, vector<4x8x8xf32> -> vector<4x8x8xf32>
    %41 = tpu.transpose %40, [0, 2, 1] : vector<4x8x8xf32> -> vector<4x8x8xf32>
    "tpu.trace_stop"() : () -> ()
    %c0_33 = arith.constant 0 : index
    %c0_34 = arith.constant 0 : index
    %c24_35 = arith.constant 24 : index
    %42 = vector.load %arg15[%c0_33, %c0_34, %c24_35] : memref<4x8x32xf32, #tpu.memory_space<vmem>>, vector<4x8x8xf32>
    tpu.vector_store %arg15[%c0_33, %c0_34, %c24_35], %41 {strides = array<i32>} : memref<4x8x32xf32, #tpu.memory_space<vmem>>, vector<4x8x8xf32>,
    %c0_36 = arith.constant 0 : index
    %c0_37 = arith.constant 0 : index
    %c0_38 = arith.constant 0 : index
    %c0_39 = arith.constant 0 : index
    %43 = vector.load %arg4[%c0_36, %c0_37, %c0_38, %c0_39] : memref<1x4x8x32xf32, #tpu.memory_space<vmem>>, vector<1x4x8x32xf32>
    %44 = vector.shape_cast %43 : vector<1x4x8x32xf32> to vector<4x8x32xf32>
    %c0_40 = arith.constant 0 : index
    %c0_41 = arith.constant 0 : index
    %c0_42 = arith.constant 0 : index
    %45 = vector.load %arg15[%c0_40, %c0_41, %c0_42] : memref<4x8x32xf32, #tpu.memory_space<vmem>>, vector<4x8x32xf32>
    %46 = vector.shape_cast %45 : vector<4x8x32xf32> to vector<32x32xf32>
    %47 = arith.truncf %46 : vector<32x32xf32> to vector<32x32xbf16>
    %c0_43 = arith.constant 0 : index
    %c0_44 = arith.constant 0 : index
    %48 = vector.load %arg6[%c0_43, %c0_44] : memref<32x32xbf16, #tpu.memory_space<vmem>>, vector<32x32xbf16>
    %cst_45 = arith.constant dense<0.000000e+00> : vector<32x32xf32>
    %49 = tpu.matmul %47, %48, %cst_45 {dimension_numbers = #tpu.dot_dimension_numbers<[1], [0], [0], [1], [0, 0, 1, 1], [], []>} : vector<32x32xbf16>, vector<32x32xbf16>, vector<32x32xf32> -> vector<32x32xf32>
    %c0_46 = arith.constant 0 : index
    %c0_47 = arith.constant 0 : index
    %50 = vector.load %arg7[%c0_46, %c0_47] : memref<1x32xf32, #tpu.memory_space<vmem>>, vector<1x32xf32>
    %51 = vector.broadcast %50 : vector<1x32xf32> to vector<32x32xf32>
    %52 = arith.addf %49, %51 : vector<32x32xf32>
    %53 = vector.shape_cast %44 : vector<4x8x32xf32> to vector<32x32xf32>
    %54 = arith.addf %53, %52 : vector<32x32xf32>
    %c0_48 = arith.constant 0 : index
    %c0_49 = arith.constant 0 : index
    %55 = vector.load %arg8[%c0_48, %c0_49] : memref<1x32xf32, #tpu.memory_space<vmem>>, vector<1x32xf32>
    %c0_50 = arith.constant 0 : index
    %c0_51 = arith.constant 0 : index
    %56 = vector.load %arg9[%c0_50, %c0_51] : memref<1x32xf32, #tpu.memory_space<vmem>>, vector<1x32xf32>
    %cst_52 = arith.constant dense<0.000000e+00> : vector<32xf32>
    %57 = vector.multi_reduction <add>, %54, %cst_52 [1] : vector<32x32xf32> to vector<32xf32>
    %58 = vector.shape_cast %57 : vector<32xf32> to vector<32x1xf32>
    %cst_53 = arith.constant 3.200000e+01 : f32
    %59 = vector.broadcast %cst_53 : f32 to vector<32x1xf32>
    %60 = arith.divf %58, %59 : vector<32x1xf32>
    %61 = vector.broadcast %60 : vector<32x1xf32> to vector<32x32xf32>
    %62 = arith.subf %54, %61 : vector<32x32xf32>
    %63 = arith.mulf %62, %62 : vector<32x32xf32>
    %cst_54 = arith.constant dense<0.000000e+00> : vector<32xf32>
    %64 = vector.multi_reduction <add>, %63, %cst_54 [1] : vector<32x32xf32> to vector<32xf32>
    %65 = vector.shape_cast %64 : vector<32xf32> to vector<32x1xf32>
    %cst_55 = arith.constant 3.200000e+01 : f32
    %66 = vector.broadcast %cst_55 : f32 to vector<32x1xf32>
    %67 = arith.divf %65, %66 : vector<32x1xf32>
    %68 = vector.broadcast %60 : vector<32x1xf32> to vector<32x32xf32>
    %69 = arith.subf %54, %68 : vector<32x32xf32>
    %cst_56 = arith.constant 9.99999974E-6 : f32
    %70 = vector.broadcast %cst_56 : f32 to vector<32x1xf32>
    %71 = arith.addf %67, %70 : vector<32x1xf32>
    %72 = math.rsqrt %71 : vector<32x1xf32>
    %73 = vector.broadcast %72 : vector<32x1xf32> to vector<32x32xf32>
    %74 = arith.mulf %69, %73 : vector<32x32xf32>
    %75 = vector.broadcast %55 : vector<1x32xf32> to vector<32x32xf32>
    %76 = arith.mulf %74, %75 : vector<32x32xf32>
    %77 = vector.broadcast %56 : vector<1x32xf32> to vector<32x32xf32>
    %78 = arith.addf %76, %77 : vector<32x32xf32>
    %79 = arith.truncf %78 : vector<32x32xf32> to vector<32x32xbf16>
    %c0_57 = arith.constant 0 : index
    %c0_58 = arith.constant 0 : index
    %80 = vector.load %arg10[%c0_57, %c0_58] : memref<32x64xbf16, #tpu.memory_space<vmem>>, vector<32x64xbf16>
    %cst_59 = arith.constant dense<0.000000e+00> : vector<32x64xf32>
    %81 = tpu.matmul %79, %80, %cst_59 {dimension_numbers = #tpu.dot_dimension_numbers<[1], [0], [0], [1], [0, 0, 1, 1], [], []>} : vector<32x32xbf16>, vector<32x64xbf16>, vector<32x64xf32> -> vector<32x64xf32>
    %c0_60 = arith.constant 0 : index
    %c0_61 = arith.constant 0 : index
    %82 = vector.load %arg11[%c0_60, %c0_61] : memref<1x64xf32, #tpu.memory_space<vmem>>, vector<1x64xf32>
    %83 = vector.broadcast %82 : vector<1x64xf32> to vector<32x64xf32>
    %84 = arith.addf %81, %83 : vector<32x64xf32>
    %cst_62 = arith.constant 0.000000e+00 : f32
    %85 = vector.broadcast %cst_62 : f32 to vector<32x64xf32>
    %86 = arith.maximumf %84, %85 : vector<32x64xf32>
    %87 = arith.truncf %86 : vector<32x64xf32> to vector<32x64xbf16>
    %c0_63 = arith.constant 0 : index
    %c0_64 = arith.constant 0 : index
    %88 = vector.load %arg12[%c0_63, %c0_64] : memref<64x32xbf16, #tpu.memory_space<vmem>>, vector<64x32xbf16>
    %cst_65 = arith.constant dense<0.000000e+00> : vector<32x32xf32>
    %89 = tpu.matmul %87, %88, %cst_65 {dimension_numbers = #tpu.dot_dimension_numbers<[1], [0], [0], [1], [0, 0, 1, 1], [], []>} : vector<32x64xbf16>, vector<64x32xbf16>, vector<32x32xf32> -> vector<32x32xf32>
    %c0_66 = arith.constant 0 : index
    %c0_67 = arith.constant 0 : index
    %90 = vector.load %arg13[%c0_66, %c0_67] : memref<1x32xf32, #tpu.memory_space<vmem>>, vector<1x32xf32>
    %91 = vector.broadcast %90 : vector<1x32xf32> to vector<32x32xf32>
    %92 = arith.addf %89, %91 : vector<32x32xf32>
    %93 = arith.addf %54, %92 : vector<32x32xf32>
    %94 = vector.shape_cast %93 : vector<32x32xf32> to vector<4x8x32xf32>
    %c0_68 = arith.constant 0 : index
    %c0_69 = arith.constant 0 : index
    %c0_70 = arith.constant 0 : index
    %c0_71 = arith.constant 0 : index
    %95 = vector.load %arg14[%c0_68, %c0_69, %c0_70, %c0_71] : memref<1x4x8x32xf32, #tpu.memory_space<vmem>>, vector<1x4x8x32xf32>
    %96 = vector.shape_cast %95 : vector<1x4x8x32xf32> to vector<4x8x32xf32>
    %97 = vector.shape_cast %94 : vector<4x8x32xf32> to vector<1x4x8x32xf32>
    tpu.vector_store %arg14[%c0_68, %c0_69, %c0_70, %c0_71], %97 {strides = array<i32>} : memref<1x4x8x32xf32, #tpu.memory_space<vmem>>, vector<1x4x8x32xf32>,
    return
  }
  func.func @transform_0(%arg0: i32, %arg1: i32) -> (i32, i32, i32, i32) {
    %c0_i32 = arith.constant 0 : i32
    %c0_i32_0 = arith.constant 0 : i32
    %c0_i32_1 = arith.constant 0 : i32
    %c0_i32_2 = arith.constant 0 : i32
    return %arg0, %c0_i32, %c0_i32_0, %c0_i32_1 : i32, i32, i32, i32
  }
  func.func @transform_1(%arg0: i32, %arg1: i32) -> (i32, i32, i32, i32) {
    %c0_i32 = arith.constant 0 : i32
    %c0_i32_0 = arith.constant 0 : i32
    %c0_i32_1 = arith.constant 0 : i32
    return %arg0, %arg1, %c0_i32, %c0_i32_0 : i32, i32, i32, i32
  }
  func.func @transform_2(%arg0: i32, %arg1: i32) -> (i32, i32, i32, i32) {
    %c0_i32 = arith.constant 0 : i32
    %c0_i32_0 = arith.constant 0 : i32
    %c0_i32_1 = arith.constant 0 : i32
    return %arg0, %c0_i32, %arg1, %c0_i32_0 : i32, i32, i32, i32
  }
  func.func @transform_3(%arg0: i32, %arg1: i32) -> (i32, i32) {
    %c0_i32 = arith.constant 0 : i32
    %c0_i32_0 = arith.constant 0 : i32
    %c0_i32_1 = arith.constant 0 : i32
    return %c0_i32, %c0_i32_0 : i32, i32
  }
  func.func @transform_4(%arg0: i32, %arg1: i32) -> (i32, i32) {
    %c0_i32 = arith.constant 0 : i32
    %c0_i32_0 = arith.constant 0 : i32
    %c0_i32_1 = arith.constant 0 : i32
    return %c0_i32, %c0_i32_0 : i32, i32
  }
  func.func @transform_5(%arg0: i32, %arg1: i32) -> (i32, i32) {
    %c0_i32 = arith.constant 0 : i32
    %c0_i32_0 = arith.constant 0 : i32
    %c0_i32_1 = arith.constant 0 : i32
    return %c0_i32, %c0_i32_0 : i32, i32
  }
  func.func @transform_6(%arg0: i32, %arg1: i32) -> (i32, i32) {
    %c0_i32 = arith.constant 0 : i32
    %c0_i32_0 = arith.constant 0 : i32
    %c0_i32_1 = arith.constant 0 : i32
    return %c0_i32, %c0_i32_0 : i32, i32
  }
  func.func @transform_7(%arg0: i32, %arg1: i32) -> (i32, i32) {
    %c0_i32 = arith.constant 0 : i32
    %c0_i32_0 = arith.constant 0 : i32
    %c0_i32_1 = arith.constant 0 : i32
    return %c0_i32, %c0_i32_0 : i32, i32
  }
  func.func @transform_8(%arg0: i32, %arg1: i32) -> (i32, i32) {
    %c0_i32 = arith.constant 0 : i32
    %c0_i32_0 = arith.constant 0 : i32
    %c0_i32_1 = arith.constant 0 : i32
    return %c0_i32, %c0_i32_0 : i32, i32
  }
  func.func @transform_9(%arg0: i32, %arg1: i32) -> (i32, i32) {
    %c0_i32 = arith.constant 0 : i32
    %c0_i32_0 = arith.constant 0 : i32
    %c0_i32_1 = arith.constant 0 : i32
    return %c0_i32, %c0_i32_0 : i32, i32
  }
  func.func @transform_10(%arg0: i32, %arg1: i32) -> (i32, i32) {
    %c0_i32 = arith.constant 0 : i32
    %c0_i32_0 = arith.constant 0 : i32
    %c0_i32_1 = arith.constant 0 : i32
    return %c0_i32, %c0_i32_0 : i32, i32
  }
  func.func @transform_11(%arg0: i32, %arg1: i32) -> (i32, i32) {
    %c0_i32 = arith.constant 0 : i32
    %c0_i32_0 = arith.constant 0 : i32
    %c0_i32_1 = arith.constant 0 : i32
    return %c0_i32, %c0_i32_0 : i32, i32
  }
  func.func @transform_12(%arg0: i32, %arg1: i32) -> (i32, i32, i32, i32) {
    %c0_i32 = arith.constant 0 : i32
    %c0_i32_0 = arith.constant 0 : i32
    %c0_i32_1 = arith.constant 0 : i32
    return %arg0, %c0_i32, %arg1, %c0_i32_0 : i32, i32, i32, i32
  }
}

</mosaic_0001>

<bundles_post_ra>
// kernel: special_encoder.2
= control target key start
LH: loop header
LB: loop body
LE: loop exit
PB: predicated region body
PF: predicated region fallthrough
CT: control target
= control target key end

     0   :  { %s3475_s0 = inlined_call_operand.vmem [shape: bf16[2,4,16,32], index: 0, kind: input, shape index: {}]   ;;  %s3476_s1 = inlined_call_operand.vmem [shape: bf16[2,16,16,16], index: 1, kind: input, shape index: {}]   ;;  %s3477_s2 = inlined_call_operand.vmem [shape: f32[2,4,16,32], index: 2, kind: input, shape index: {}, may-alias: {2,12}]   ;;  %s3478_s3 = inlined_call_operand.vmem [shape: bf16[16,4], index: 3, kind: input, shape index: {}]   ;;  %s3479_s4 = inlined_call_operand.vmem [shape: bf16[32,32], index: 4, kind: input, shape index: {}]   ;;  %s3480_s5 = inlined_call_operand.vmem [shape: f32[1,32], index: 5, kind: input, shape index: {}]   ;;  %s3481_s6 = inlined_call_operand.vmem [shape: f32[1,32], index: 6, kind: input, shape index: {}]   ;;  %s3482_s7 = inlined_call_operand.vmem [shape: f32[1,32], index: 7, kind: input, shape index: {}]   ;;  %s3483_s8 = inlined_call_operand.vmem [shape: bf16[32,64], index: 8, kind: input, shape index: {}]   ;;  %s3484_s9 = inlined_call_operand.vmem [shape: f32[1,64], index: 9, kind: input, shape index: {}]   ;;  %s3485_s10 = inlined_call_operand.vmem [shape: bf16[64,32], index: 10, kind: input, shape index: {}]   ;;  %s3486_s11 = inlined_call_operand.vmem [shape: f32[1,32], index: 11, kind: input, shape index: {}]   ;;  %s3487_s12 = inlined_call_operand.vmem [shape: f32[2,4,16,32], index: 12, kind: output, shape index: {}, may-alias: {2,12}]  }
   0x1   :  { %3490 = sst [smem:[#allocation7_spill]] %s3486_s11 }
   0x2   :  { %3491 = sst [smem:[#allocation8_spill]] %s3487_s12 }
   0x3   :  { %s3145_s21 = smov 0   ;;  %s3147_s22 = smov 0  }
   0x4   :  { %s3149_s23 = smov 0   ;;  %s3151_s24 = smov 0  }
   0x5   :  { %s3153_s25 = smov 0   ;;  %s3155_s26 = smov 0  }
   0x6   :  { %s3157_s27 = smov 0  }
   0x7 LB: > { %s31_s28 = sadd.s32 1, %s3055_s25  ;;  %s34_s29 = sadd.s32 1, %s3059_s26  ;;  %s3063_s27 = sphi %s3157_s27, %s22_s27   ;;  %s3059_s26 = sphi %s3155_s26, %s3504_s26   ;;  %s3055_s25 = sphi %s3153_s25, %s3503_s25   ;;  %s3051_s24 = sphi %s3151_s24, %s3502_s24   ;;  %s3047_s23 = sphi %s3149_s23, %s3501_s23   ;;  %s3043_s22 = sphi %s3147_s22, %s3500_s22   ;;  %s3039_s21 = sphi %s3145_s21, %s3499_s21  }
   0x8   : > { %p32_p0 = scmp.ge.s32.totalorder %s31_s28, 2  ;;  %s2686_s30 = sadd.s32 4294967295, %s3063_s27  }
   0x9   : > { %p104_p1 = scmp.ne.s32.totalorder %s3043_s22, %s3039_s21  ;;  %p105_p2 = scmp.eq.s32.totalorder %s3063_s27, 0 }
   0xa   : > { %s3506_s28 = smov (%p32_p0, %s31_s28), 0  ;;  %s3508_s29 = smov (!%p32_p0, %s34_s29), %s3059_s26 }
   0xb   : > { %3492 = sst [smem:[#allocation5_spill]] %s3506_s28  ;;  %p36_p3 = scmp.ge.s32.totalorder %s3508_s29, 2 }
   0xc   : > { %p325_p4 = scmp.eq.s32.totalorder %s2686_s30, 3  ;;  %s93_s13 = ssub.s32 %s3055_s25, %s3506_s28 }
   0xd   : > { %p106_p5 = por %p105_p2, %p104_p1  ;;  %s3510_s29 = smov (%p36_p3, %s3508_s29), 0 }
   0xe   : > { %p3193_p6 = por %p325_p4, %p104_p1  ;;  %s92_s15 = ssub.s32 %s3059_s26, %s3510_s29 }
   0xf   : > { %s94_s16 = sor.u32 %s93_s13, %s92_s15  ;;  %s97_s17 = sadd.s32 1, %s3043_s22 }
  0x10   : > { %s3493_s14 = scalar_select %p3193_p6, 1, 0 }
  0x11   : > { %p95_p7 = scmp.eq.s32.totalorder %s94_s16, 0  ;;  %p2689_p8 = scmp.ge.s32.totalorder %s3063_s27, 4 }
  0x12   : > { %3494 = sst [smem:[#allocation6_spill]] %s3493_s14 }
  0x13   : > { %s3201_s18 = scalar_select %p95_p7, %s3043_s22, %s97_s17  }
  0x14   : > { %374 = sbr.rel (%p2689_p8) target bundleno = 35 (0x23), region = 52 }
  0x1b   : > { %399 = sbr.rel (!%p106_p5) target bundleno = 35 (0x23), region = 64  ;;  %s401_s19 = sand.u32 (%p106_p5), 1, %s3043_s22  }
  0x1c   : > { %s2691_s20 = sshll.u32 (%p106_p5), %s3059_s26, 3  ;;  %s2690_s30 = sshll.u32 (%p106_p5), %s401_s19, 5 }
  0x1d   : > { %s405_s28 = sadd.s32 (%p106_p5), %s3055_s25, %s2691_s20  ;;  %s403_s15 = scalar_lea.vmem (%p106_p5), [#allocation3], %s2690_s30 }
  0x1e   : > { %s2692_s12 = sshll.u32 (%p106_p5), %s405_s28, 3 }
  0x1f   : > { %s407_s13 = scalar_lea.vmem (%p106_p5), %s3477_s2, %s2692_s12 }
  0x20   : > { %v441_v0 = vld [vmem:[%s407_s13] sm:$0xff] (%p106_p5)  ;;  %v443_v1 = vld [vmem:[%s407_s13 + $0x10] sm:$0xff] (%p106_p5) }
  0x21   : > { %v445_v2 = vld [vmem:[%s407_s13 + $0x20] sm:$0xff] (%p106_p5)  ;;  %442 = vst [vmem:[%s403_s15] sm:$0xff] (%p106_p5), %v441_v0  ;;  %444 = vst [vmem:[%s403_s15 + $0x8] sm:$0xff] (%p106_p5), %v443_v1  ;;  %v447_v3 = vld [vmem:[%s407_s13 + $0x30] sm:$0xff] (%p106_p5) }
  0x22   : > { %446 = vst [vmem:[%s403_s15 + $0x10] sm:$0xff] %v445_v2  ;;  %448 = vst [vmem:[%s403_s15 + $0x18] sm:$0xff] %v447_v3 }
  0x23 PF: > { %p2693_p9 = scmp.ge.s32.totalorder %s3063_s27, 1  ;;  %p453_p10 = scmp.lt.s32.totalorder %s3063_s27, 5 }
  0x25   : > { %p454_p11 = pnand %p2693_p9, %p453_p10 }
  0x26   : > { %v2952_v4 = vld [vmem:[%s3478_s3] sm:$0xff] (!%p454_p11)   ;;  %v555_v5 = vlaneseq (!%p454_p11)  ;;  %v3065_v6 = vmov (!%p454_p11), 0.0   ;;  %p515_p12 = scmp.lt.s32.totalorder (!%p454_p11), %s3051_s24, 1  ;;  %s2698_s12 = sshll.u32 (!%p454_p11), %s3047_s23, 3  ;;  %vm3066_vm0 = vmmov (!%p454_p11), 0   ;;  %vm630_vm1 = vcmask (!%p454_p11), 130048  }
  0x27   : > { %457 = sbr.rel (%p454_p11) target bundleno = 2369 (0x941), region = 102  ;;  %2804 = vmatprep.subr.bf16.mxu0 (!%p454_p11), %v3065_v6  ;;  %650 = vxpose.xlu0.c.b16.start.end [1/1] (short) (narrow) (!%p454_p11), %v2952_v4, 16  ;;  %p523_p13 = scmp.lt.s32.totalorder (!%p454_p11), %s2698_s12, 15  ;;  %v3067_v7 = vmov (!%p454_p11), 1983009808   ;;  %v550_v12 = vcombine.low (!%p454_p11), %v3065_v6, %v3065_v6  ;;  %v551_v14 = vcombine.high (!%p454_p11), %v3065_v6, %v3065_v6  ;;  %vm632_vm2 = vcmask (!%p454_p11), 261120  }
  0x28   : > { %2820 = vmatprep.mubr.msk.bf16.mxu0 (!%p454_p11), %vm3066_vm0, %v3065_v6  ;;  %v553_v8 = vunpack.c.l.s4 (!%p454_p11), %v3067_v7  ;;  %v556_v9 = vshrl.u32 (!%p454_p11), %v555_v5, 7  ;;  %v3068_v10 = vmov (!%p454_p11), 1934713408   ;;  %s3071_s17 = smov (!%p454_p11), 64   ;;  %s3072_s19 = smov (!%p454_p11), 96   ;;  %vm634_vm3 = vcmask (!%p454_p11), 392192  }
  0x29   : > { %v569_v11 = vunpack.c.l.s4 (!%p454_p11), %v3068_v10  ;;  %vm636_vm4 = vcmask (!%p454_p11), 523264   ;;  %vm638_vm5 = vcmask (!%p454_p11), 654336   ;;  %vm640_vm6 = vcmask (!%p454_p11), 785408   ;;  %s3076_s28 = smov (!%p454_p11), 120   ;;  %s3077_s11 = smov (!%p454_p11), 104  }
  0x2a   : > { %v554_v13 = vunpack.c.0.s8 (!%p454_p11), %v553_v8  ;;  %vm642_vm7 = vcmask (!%p454_p11), 916480   ;;  %vm1203_vm8 = vcmask (!%p454_p11), 64512   ;;  %vm1524_vm9 = vcmask (!%p454_p11), 130112  }
  0x2b   : > { %v570_v15 = vunpack.c.0.s8 (!%p454_p11), %v569_v11  ;;  %vm1845_vm10 = vcmask (!%p454_p11), 195712   ;;  %vm2166_vm11 = vcmask (!%p454_p11), 261312  }
  0x2c   : > { %v3229_v16 = vsub.s32 (!%p454_p11), %v554_v13, %v556_v9 }
  0x2d   : > { %v3237_v18 = vsub.s32 (!%p454_p11), %v570_v15, %v556_v9 }
  0x2e   : > { %s516_s14 = scalar_select %p515_p12, %s3051_s24, 1  ;;  %v558_v17 = vrot.slane %v550_v12, %v3229_v16  ;;  %v565_v19 = vrot.slane %v551_v14, %v3229_v16 }
  0x2f   : > { %s3512_s12 = smov (!%p523_p13, %s2698_s12), 15 }
  0x30   : > { %s2768_s16 = sshll.u32 %s516_s14, 5  ;;  %s2699_s30 = sshll.u32 %s3512_s12, 1  ;;  %v567_v21 = vcombine.high %v558_v17, %v558_v17  ;;  %v566_v22 = vcombine.low %v558_v17, %v558_v17  ;;  %v582_v23 = vcombine.low %v565_v19, %v565_v19  ;;  %v583_v27 = vcombine.high %v565_v19, %v565_v19 }
  0x31   : > { %s3227_s20 = scalar_lea.vmem %s3475_s0, %s2768_s16  ;;  %s527_s13 = sadd.s32 %s2768_s16, %s2699_s30 }
  0x32   : > { %s2701_s15 = sshll.u32 %s527_s13, 2  ;;  %v581_v25 = vrot.slane %v567_v21, %v3237_v18  ;;  %v574_v26 = vrot.slane %v566_v22, %v3237_v18  ;;  %s3069_s12 = smov 32   ;;  %v590_v30 = vrot.slane %v582_v23, %v3237_v18  ;;  %v597_v32 = vrot.slane %v583_v27, %v3237_v18 }
  0x33   : > { %s3234_s14 = scalar_lea.vmem %s3476_s1, %s2701_s15  ;;  %s3070_s16 = smov 16  }
  0x34   : > { %v2953_v20 = vld [vmem:[%s3234_s14] sm:$0xff]   ;;  %v2954_v28 = vld [vmem:[%s3234_s14 + $0x8] sm:$0xff]   ;;  %v2955_v29 = vld [vmem:[%s3234_s14 + $0x10] sm:$0xff]   ;;  %607 = vrot.lane.b32.xlu1 %v581_v25, %s3069_s12  ;;  %v598_v31 = vcombine.high %v574_v26, %v3065_v6  ;;  %v599_v35 = vcombine.high %v581_v25, %v3065_v6  ;;  %s3073_s30 = smov 48   ;;  %v600_v36 = vcombine.high %v590_v30, %v3065_v6  ;;  %s3074_s13 = smov 80   ;;  %v601_v37 = vcombine.high %v597_v32, %v3065_v6 }
  0x35   : > { %v710_v24 = vsel %vm630_vm1, %v2953_v20, 0  ;;  %v713_v33 = vsel %vm630_vm1, %v2954_v28, 0  ;;  %v716_v34 = vsel %vm630_vm1, %v2955_v29, 0  ;;  %v2956_v38 = vld [vmem:[%s3234_s14 + $0x18] sm:$0xff]   ;;  %s3075_s15 = smov 112   ;;  %v2957_v40 = vld [vmem:[%s3234_s14 + $0x20] sm:$0xff]  }
  0x36   : > { %2805 = vmatpush3.bf16.xpose.msra.mxu0 %v710_v24  ;;  %603 = vrot.lane.b32.xlu0 %v598_v31, %s3070_s16  ;;  %v719_v39 = vsel %vm630_vm1, %v2956_v38, 0  ;;  %v722_v41 = vsel %vm630_vm1, %v2957_v40, 0  ;;  %v2958_v42 = vld [vmem:[%s3234_s14 + $0x28] sm:$0xff]   ;;  %v2959_v44 = vld [vmem:[%s3234_s14 + $0x30] sm:$0xff]   ;;  %v2960_v46 = vld [vmem:[%s3234_s14 + $0x38] sm:$0xff]   ;;  %s3079_s14 = smov 24  }
  0x37   : > { %2806 = vmatprep.subr.bf16.mxu0 %v3065_v6  ;;  %v725_v43 = vsel %vm630_vm1, %v2958_v42, 0  ;;  %v728_v45 = vsel %vm630_vm1, %v2959_v44, 0  ;;  %v731_v47 = vsel %vm630_vm1, %v2960_v46, 0  ;;  %v2973_v38 = vld [vmem:[%s3227_s20 + $0x18] sm:$0xff]   ;;  %v2962_v40 = vld [vmem:[%s3227_s20 + $0x8] sm:$0xff]  }
  0x38   : > { %615 = vrot.lane.b32.xlu1 %v590_v30, %s3071_s17  ;;  %v2965_v42 = vld [vmem:[%s3227_s20 + $0x18] sm:$0xff]   ;;  %v2967_v44 = vld [vmem:[%s3227_s20 + $0x8] sm:$0xff]  }
  0x39   : > { %v2970_v46 = vld [vmem:[%s3227_s20 + $0x18] sm:$0xff]  }
  0x3a   : > { %623 = vrot.lane.b32.xlu0 %v597_v32, %s3072_s19 }
  0x3c   : > { %611 = vrot.lane.b32.xlu1 %v599_v35, %s3073_s30 }
  0x3e   : > { %2807 = vmatpush3.bf16.xpose.msra.mxu0 %v713_v33 }
  0x3f   : > { %2808 = vmatprep.subr.bf16.mxu0 %v3065_v6 }
  0x40   : > { %619 = vrot.lane.b32.xlu1 %v600_v36, %s3074_s13  ;;  %v2969_v36 = vld [vmem:[%s3227_s20] sm:$0xff]  }
  0x44   : > { %627 = vrot.lane.b32.xlu1 %v601_v37, %s3075_s15  ;;  %v2972_v37 = vld [vmem:[%s3227_s20 + $0x8] sm:$0xff]  }
  0x46   : > { %2809 = vmatpush3.bf16.xpose.msra.mxu0 %v716_v34 }
  0x47   : > { %2810 = vmatprep.subr.bf16.mxu0 %v3065_v6 }
  0x4e   : > { %2811 = vmatpush3.bf16.xpose.msra.mxu0 %v719_v39  ;;  %v2961_v39 = vld [vmem:[%s3227_s20] sm:$0xff]  }
  0x4f   : > { %2812 = vmatprep.subr.bf16.mxu0 %v3065_v6 }
  0x56   : > { %2813 = vmatpush3.bf16.xpose.msra.mxu0 %v722_v41  ;;  %v2963_v41 = vld [vmem:[%s3227_s20 + $0x10] sm:$0xff]  }
  0x57   : > { %2814 = vmatprep.subr.bf16.mxu0 %v3065_v6 }
  0x5e   : > { %2815 = vmatpush3.bf16.xpose.msra.mxu0 %v725_v43  ;;  %v2966_v43 = vld [vmem:[%s3227_s20] sm:$0xff]  }
  0x5f   : > { %2816 = vmatprep.subr.bf16.mxu0 %v3065_v6 }
  0x66   : > { %2817 = vmatpush3.bf16.xpose.msra.mxu0 %v728_v45  ;;  %v2968_v45 = vld [vmem:[%s3227_s20 + $0x10] sm:$0xff]  }
  0x67   : > { %2818 = vmatprep.subr.bf16.mxu0 %v3065_v6 }
  0x6e   : > { %2819 = vmatpush3.bf16.xpose.msra.mxu0 %v731_v47  ;;  %v2971_v47 = vld [vmem:[%s3227_s20 + $0x10] sm:$0xff]  }
  0x8d   : > { %v658_v48 = vpop.trf.xlu0 }
  0x8e   : > { %2821 = vmatmul.mubr.msk.bf16.vlgmr.msra.gmra.mrb[0].mxu0 %vm630_vm1, %v658_v48 }
  0xa6   : > { %v608_v49 = vpop.permute.xlu1 %607 }
  0xa8   : > { %v604_v51 = vpop.permute.xlu0 %603 }
  0xa9   : > { %v631_v52 = vsel %vm630_vm1, %v574_v26, %v604_v51 }
  0xaa   : > { %v616_v50 = vpop.permute.xlu1 %615  ;;  %v633_v54 = vsel %vm632_vm2, %v631_v52, %v608_v49 }
  0xac   : > { %v624_v59 = vpop.permute.xlu0 %623 }
  0xae   : > { %v612_v53 = vpop.permute.xlu1 %611 }
  0xaf   : > { %v635_v55 = vsel %vm634_vm3, %v633_v54, %v612_v53 }
  0xb0   : > { %v637_v57 = vsel %vm636_vm4, %v635_v55, %v616_v50 }
  0xb2   : > { %v620_v56 = vpop.permute.xlu1 %619 }
  0xb3   : > { %v639_v58 = vsel %vm638_vm5, %v637_v57, %v620_v56 }
  0xb4   : > { %v641_v60 = vsel %vm640_vm6, %v639_v58, %v624_v59 }
  0xb6   : > { %v628_v61 = vpop.permute.xlu1 %627 }
  0xb7   : > { %v643_v62 = vsel %vm642_vm7, %v641_v60, %v628_v61 }
 0x161   : > { %v767_v63 = vpop.f32.mrb[0].mxu0 }
 0x162   : > { %v768_v0 = vadd.f32 %v767_v63, %v643_v62  ;;  %v2822_v1 = vpop.f32.mrb[1].mxu0 }
 0x163   : > { %v770_v2 = vpop.f32.mrb[2].mxu0 }
 0x164   : > { %777 = vrot.lane.b32.xlu1 %v768_v0, %s3072_s19  ;;  %774 = vrot.lane.b32.xlu0 %v768_v0, %s3075_s15  ;;  %v2823_v3 = vpop.f32.mrb[3].mxu0 }
 0x168   : > { %783 = vrot.lane.b32.xlu1 %v768_v0, %s3071_s17  ;;  %780 = vrot.lane.b32.xlu0 %v768_v0, %s3074_s13 }
 0x16c   : > { %789 = vrot.lane.b32.xlu1 %v768_v0, %s3069_s12  ;;  %786 = vrot.lane.b32.xlu0 %v768_v0, %s3073_s30  ;;  %s460_s30 = sand.u32 1, %s3039_s21  }
 0x16d   : > { %s3374_s13 = sshll.u32 %s460_s30, 5 }
 0x170   : > { %792 = vrot.lane.b32.xlu0 %v768_v0, %s3070_s16 }
 0x1d6   : > { %v778_v4 = vpop.permute.xlu1 %777  ;;  %v775_v5 = vpop.permute.xlu0 %774 }
 0x1d7   : > { %v795_v11 = vcombine.low %v768_v0, %v778_v4 }
 0x1d9   : > { %v802_v15 = vrot.slane %v795_v11, %v3229_v16  ;;  %v2975_v11 = vld [vmem:[%s3227_s20 + $0x8] sm:$0xff]  }
 0x1da   : > { %v784_v6 = vpop.permute.xlu1 %783  ;;  %v781_v7 = vpop.permute.xlu0 %780 }
 0x1db   : > { %v803_v8 = vcombine.low %v775_v5, %v781_v7 }
 0x1dd   : > { %v810_v12 = vrot.slane %v803_v8, %v3229_v16 }
 0x1de   : > { %v790_v9 = vpop.permute.xlu1 %789  ;;  %v787_v10 = vpop.permute.xlu0 %786 }
 0x1df   : > { %v811_v13 = vcombine.low %v784_v6, %v790_v9  ;;  %v827_v19 = vcombine.low %v802_v15, %v810_v12  ;;  %v828_v22 = vcombine.high %v802_v15, %v810_v12  ;;  %v2976_v12 = vld [vmem:[%s3227_s20 + $0x18] sm:$0xff]  }
 0x1e1   : > { %v818_v20 = vrot.slane %v811_v13, %v3229_v16  ;;  %v835_v25 = vrot.slane %v827_v19, %v3237_v18  ;;  %v842_v30 = vrot.slane %v828_v22, %v3237_v18 }
 0x1e2   : > { %v793_v14 = vpop.permute.xlu0 %792 }
 0x1e3   : > { %v819_v17 = vcombine.low %v787_v10, %v793_v14  ;;  %v2974_v10 = vld [vmem:[%s3227_s20 + $0x10] sm:$0xff]  }
 0x1e5   : > { %v826_v21 = vrot.slane %v819_v17, %v3229_v16 }
 0x1e7   : > { %v843_v23 = vcombine.low %v818_v20, %v826_v21  ;;  %v844_v24 = vcombine.high %v818_v20, %v826_v21 }
 0x1e9   : > { %v851_v26 = vrot.slane %v843_v23, %v3237_v18  ;;  %v858_v27 = vrot.slane %v844_v24, %v3237_v18  ;;  %v2964_v18 = vld [vmem:[%s3227_s20] sm:$0xff]   ;;  %s3078_s20 = smov 8  }
 0x1eb   : > { %v860_v28 = vcombine.high %v835_v25, %v851_v26  ;;  %v859_v29 = vcombine.low %v835_v25, %v851_v26  ;;  %v861_v32 = vcombine.low %v842_v30, %v858_v27  ;;  %v862_v34 = vcombine.high %v842_v30, %v858_v27 }
 0x1ed   : > { %v866_v31 = vsel %vm630_vm1, %v860_v28, -inf  ;;  %v863_v16 = vsel %vm630_vm1, %v859_v29, -inf  ;;  %v869_v33 = vsel %vm630_vm1, %v861_v32, -inf  ;;  %v872_v35 = vsel %vm630_vm1, %v862_v34, -inf }
 0x1ee   : > { %867 = vmax.xlane.f32.xlu0 %v866_v31  ;;  %864 = vmax.xlane.f32.xlu1 %v863_v16 }
 0x1f2   : > { %870 = vmax.xlane.f32.xlu0 %v869_v33 }
 0x1f6   : > { %873 = vmax.xlane.f32.xlu0 %v872_v35 }
 0x20c   : > { %1236 = vrot.lane.b32.xlu0 %v2964_v18, %s3076_s28 }
 0x210   : > { %1878 = vrot.lane.b32.xlu0 %v2969_v36, %s3077_s11 }
 0x214   : > { %1880 = vrot.lane.b32.xlu0 %v2972_v37, %s3077_s11 }
 0x218   : > { %1884 = vrot.lane.b32.xlu0 %v2973_v38, %s3077_s11 }
 0x21b   : > { %943 = vxpose.xlu1.c.b16.start.end [1/1] (short) (narrow) %v2961_v39, 16 }
 0x21f   : > { %1238 = vrot.lane.b32.xlu1 %v2962_v40, %s3076_s28 }
 0x223   : > { %1240 = vrot.lane.b32.xlu1 %v2963_v41, %s3076_s28 }
 0x227   : > { %1242 = vrot.lane.b32.xlu1 %v2965_v42, %s3076_s28  ;;  %s3495_s28 = sld [smem:[#allocation7_spill]] }
 0x22b   : > { %1557 = vrot.lane.b32.xlu1 %v2966_v43, %s3075_s15 }
 0x22f   : > { %1559 = vrot.lane.b32.xlu1 %v2967_v44, %s3075_s15 }
 0x233   : > { %1561 = vrot.lane.b32.xlu1 %v2968_v45, %s3075_s15 }
 0x237   : > { %1563 = vrot.lane.b32.xlu1 %v2970_v46, %s3075_s15 }
 0x23b   : > { %1882 = vrot.lane.b32.xlu1 %v2971_v47, %s3077_s11  ;;  %s462_s11 = scalar_lea.vmem [#allocation3], %s3374_s13 }
 0x27b   : > { %v868_v48 = vpop.xlane.xlu0 %867  ;;  %v865_v49 = vpop.xlane.xlu1 %864 }
 0x27c   : > { %v876_v50 = vsub.f32 %v860_v28, %v868_v48  ;;  %v875_v51 = vsub.f32 %v859_v29, %v865_v49 }
 0x27e   : > { %v881_v52 = vmul.f32 1.442695, %v876_v50  ;;  %v879_v53 = vmul.f32 1.442695, %v875_v51 }
 0x27f   : > { %v871_v54 = vpop.xlane.xlu0 %870 }
 0x280   : > { %2985 = vpow2.f32 %v881_v52  ;;  %v877_v55 = vsub.f32 %v861_v32, %v871_v54 }
 0x281   : > { %2987 = vpow2.f32 %v879_v53  ;;  %v951_v4 = vpop.trf.xlu1 }
 0x282   : > { %v883_v56 = vmul.f32 1.442695, %v877_v55 }
 0x283   : > { %v874_v57 = vpop.xlane.xlu0 %873 }
 0x284   : > { %2989 = vpow2.f32 %v883_v56  ;;  %v878_v58 = vsub.f32 %v862_v34, %v874_v57 }
 0x286   : > { %v885_v59 = vmul.f32 1.442695, %v878_v58 }
 0x287   : > { %v1237_v14 = vpop.permute.xlu0 %1236 }
 0x288   : > { %2991 = vpow2.f32 %v885_v59 }
 0x28a   : > { %v2986_v60 = vpop.eup %2985 }
 0x28b   : > { %v2988_v61 = vpop.eup %2987  ;;  %v890_v62 = vsel %vm630_vm1, %v2986_v60, 0.0  ;;  %v1879_v17 = vpop.permute.xlu0 %1878 }
 0x28c   : > { %891 = vadd.xlane.f32.xlu0 %v890_v62  ;;  %v887_v63 = vsel %vm630_vm1, %v2988_v61, 0.0 }
 0x28d   : > { %888 = vadd.xlane.f32.xlu1 %v887_v63 }
 0x28e   : > { %v2990_v0 = vpop.eup %2989 }
 0x28f   : > { %v893_v1 = vsel %vm630_vm1, %v2990_v0, 0.0  ;;  %v1881_v20 = vpop.permute.xlu0 %1880 }
 0x291   : > { %894 = vadd.xlane.f32.xlu1 %v893_v1  ;;  %v1239_v5 = vpop.permute.xlu1 %1238 }
 0x292   : > { %v3321_v2 = vpop.eup %2991 }
 0x293   : > { %v896_v3 = vsel %vm630_vm1, %v3321_v2, 0.0  ;;  %v1885_v21 = vpop.permute.xlu0 %1884 }
 0x294   : > { %897 = vadd.xlane.f32.xlu0 %v896_v3 }
 0x295   : > { %v1241_v6 = vpop.permute.xlu1 %1240 }
 0x299   : > { %v1243_v7 = vpop.permute.xlu1 %1242 }
 0x29d   : > { %v1558_v8 = vpop.permute.xlu1 %1557 }
 0x2a1   : > { %v1560_v9 = vpop.permute.xlu1 %1559 }
 0x2a5   : > { %v1562_v13 = vpop.permute.xlu1 %1561 }
 0x2a9   : > { %v1564_v15 = vpop.permute.xlu1 %1563 }
 0x2ad   : > { %v1883_v19 = vpop.permute.xlu1 %1882 }
 0x2be   : > { %975 = vxpose.xlu1.c.b16.start.end [1/1] (short) (narrow) %v2974_v10, 16 }
 0x2c1   : > { %959 = vxpose.xlu0.c.b16.start.end [1/1] (short) (narrow) %v2975_v11, 16 }
 0x2c2   : > { %991 = vxpose.xlu1.c.b16.start.end [1/1] (short) (narrow) %v2976_v12, 16 }
 0x2c5   : > { %1601 = vxpose.xlu0.c.b16.start.end [1/1] (short) (narrow) %v1562_v13, 16 }
 0x2c6   : > { %1248 = vxpose.xlu1.c.b16.start.end [1/1] (short) (narrow) %v1237_v14, 16 }
 0x2c9   : > { %1890 = vxpose.xlu0.c.b16.start.end [1/1] (short) (narrow) %v1879_v17, 16 }
 0x2ca   : > { %1264 = vxpose.xlu1.c.b16.start.end [1/1] (short) (narrow) %v1239_v5, 16 }
 0x2cd   : > { %1922 = vxpose.xlu0.c.b16.start.end [1/1] (short) (narrow) %v1883_v19, 16 }
 0x2ce   : > { %1280 = vxpose.xlu1.c.b16.start.end [1/1] (short) (narrow) %v1241_v6, 16 }
 0x2d2   : > { %1296 = vxpose.xlu1.c.b16.start.end [1/1] (short) (narrow) %v1243_v7, 16 }
 0x2d6   : > { %1569 = vxpose.xlu1.c.b16.start.end [1/1] (short) (narrow) %v1558_v8, 16 }
 0x2da   : > { %1585 = vxpose.xlu1.c.b16.start.end [1/1] (short) (narrow) %v1560_v9, 16 }
 0x2de   : > { %1617 = vxpose.xlu1.c.b16.start.end [1/1] (short) (narrow) %v1564_v15, 16 }
 0x2e2   : > { %1906 = vxpose.xlu1.c.b16.start.end [1/1] (short) (narrow) %v1881_v20, 16 }
 0x2e6   : > { %1938 = vxpose.xlu1.c.b16.start.end [1/1] (short) (narrow) %v1885_v21, 16 }
 0x319   : > { %v892_v22 = vpop.xlane.xlu0 %891 }
 0x31a   : > { %2993 = vrcp.f32 %v892_v22  ;;  %v889_v23 = vpop.xlane.xlu1 %888 }
 0x31b   : > { %2995 = vrcp.f32 %v889_v23 }
 0x31e   : > { %v895_v24 = vpop.xlane.xlu1 %894 }
 0x31f   : > { %2997 = vrcp.f32 %v895_v24 }
 0x321   : > { %v898_v25 = vpop.xlane.xlu0 %897 }
 0x322   : > { %2999 = vrcp.f32 %v898_v25 }
 0x324   : > { %v2994_v26 = vpop.eup %2993  ;;  %v983_v27 = vpop.trf.xlu1 }
 0x325   : > { %v2996_v28 = vpop.eup %2995  ;;  %v904_v30 = vmul.f32 %v2994_v26, %v2986_v60 }
 0x326   : > { %v903_v29 = vmul.f32 %v2996_v28, %v2988_v61 }
 0x327   : > { %v967_v31 = vpop.trf.xlu0  ;;  %v908_v35 = vpack.c.bf16 %v904_v30, %v904_v30 }
 0x328   : > { %v2716_v16 = vcombine.low %v951_v4, %v967_v31  ;;  %v999_v32 = vpop.trf.xlu1  ;;  %v907_v33 = vpack.c.bf16 %v903_v29, %v903_v29  ;;  %v2977_v31 = vld [vmem:[%s3479_s4] sm:$0xff]  }
 0x329   : > { %v2998_v18 = vpop.eup %2997  ;;  %v2717_v38 = vcombine.low %v983_v27, %v999_v32  ;;  %v1329_v41 = vsel %vm630_vm1, %v908_v35, 0 }
 0x32a   : > { %2876 = vmatprep.subr.msk.bf16.mxu1 %vm630_vm1, %v907_v33  ;;  %v1024_v34 = vsel %vm630_vm1, %v907_v33, 0  ;;  %2826 = vmatprep.mubr.msk.bf16.mxu1 %vm630_vm1, %v2716_v16  ;;  %v905_v37 = vmul.f32 %v2998_v18, %v2990_v0  ;;  %v2978_v16 = vld [vmem:[%s3479_s4 + $0x8] sm:$0xff]  }
 0x32b   : > { %2825 = vmatpush3.bf16.xpose.msra.mxu1 %v1024_v34  ;;  %v1609_v51 = vpop.trf.xlu0 }
 0x32c   : > { %2877 = vmatprep.subr.msk.bf16.mxu1 %vm630_vm1, %v908_v35  ;;  %v1256_v36 = vpop.trf.xlu1  ;;  %v909_v42 = vpack.c.bf16 %v905_v37, %v905_v37  ;;  %v3000_v43 = vpop.eup %2999 }
 0x32d   : > { %v906_v45 = vmul.f32 %v3000_v43, %v3321_v2 }
 0x32e   : > { %v1650_v48 = vsel %vm630_vm1, %v909_v42, 0 }
 0x32f   : > { %v910_v49 = vpack.c.bf16 %v906_v45, %v906_v45  ;;  %v1898_v55 = vpop.trf.xlu0 }
 0x330   : > { %v1272_v39 = vpop.trf.xlu1 }
 0x331   : > { %v2724_v40 = vcombine.low %v1256_v36, %v1272_v39  ;;  %v1971_v57 = vsel %vm630_vm1, %v910_v49, 0 }
 0x332   : > { %2827 = vmatmul.mubr.msk.bf16.vlgmr.msra.gmra.mrb[0].mxu1 %vm630_vm1, %v2717_v38 }
 0x333   : > { %2831 = vmatpush3.bf16.xpose.msra.mxu1 %v1329_v41  ;;  %2832 = vmatprep.mubr.msk.bf16.mxu1 %vm630_vm1, %v2724_v40  ;;  %v1930_v60 = vpop.trf.xlu0 }
 0x334   : > { %2878 = vmatprep.subr.msk.bf16.mxu1 %vm630_vm1, %v909_v42  ;;  %v1288_v44 = vpop.trf.xlu1 }
 0x338   : > { %v1304_v46 = vpop.trf.xlu1 }
 0x339   : > { %v2725_v47 = vcombine.low %v1288_v44, %v1304_v46 }
 0x33b   : > { %2833 = vmatmul.mubr.msk.bf16.vlgmr.msra.gmra.mrb[4].mxu1 %vm630_vm1, %v2725_v47 }
 0x33c   : > { %2837 = vmatpush3.bf16.xpose.msra.mxu1 %v1650_v48  ;;  %v1577_v50 = vpop.trf.xlu1 }
 0x33d   : > { %2879 = vmatprep.subr.msk.bf16.mxu1 %vm630_vm1, %v910_v49 }
 0x340   : > { %v1593_v52 = vpop.trf.xlu1 }
 0x341   : > { %v2732_v53 = vcombine.low %v1577_v50, %v1593_v52  ;;  %v2173_v52 = vld [vmem:[%s462_s11 + $0x10] sm:$0xff] }
 0x343   : > { %2838 = vmatprep.mubr.msk.bf16.mxu1 %vm630_vm1, %v2732_v53 }
 0x344   : > { %v1625_v54 = vpop.trf.xlu1 }
 0x345   : > { %v2733_v56 = vcombine.low %v1609_v51, %v1625_v54  ;;  %v2744_v51 = vld [vmem:[%s3480_s5] ss:$0 sm:$0xff] }
 0x347   : > { %2839 = vmatmul.mubr.msk.bf16.vlgmr.msra.gmra.mrb[8].mxu1 %vm630_vm1, %v2733_v56 }
 0x348   : > { %2843 = vmatpush3.bf16.xpose.msra.mxu1 %v1971_v57  ;;  %v1914_v58 = vpop.trf.xlu1 }
 0x349   : > { %v2740_v59 = vcombine.low %v1898_v55, %v1914_v58  ;;  %2848 = vmatprep.subr.bf16.mxu1 %v2977_v31  ;;  %v2171_v55 = vld [vmem:[%s462_s11] sm:$0xff] }
 0x34b   : > { %2844 = vmatprep.mubr.msk.bf16.mxu1 %vm630_vm1, %v2740_v59 }
 0x34c   : > { %v1946_v61 = vpop.trf.xlu1 }
 0x34d   : > { %v2741_v62 = vcombine.low %v1930_v60, %v1946_v61  ;;  %v2172_v60 = vld [vmem:[%s462_s11 + $0x8] sm:$0xff] }
 0x34f   : > { %2845 = vmatmul.mubr.msk.bf16.vlgmr.msra.gmra.mrb[12].mxu1 %vm630_vm1, %v2741_v62 }
 0x350   : > { %2849 = vmatpush3.bf16.msra.mxu1 %v2977_v31  ;;  %v2980_v31 = vld [vmem:[%s3483_s8 + $0x8] sm:$0xff]  }
 0x351   : > { %2850 = vmatprep.subr.bf16.mxu1 %v2978_v16 }
 0x354   : > { %2851 = vmatpush3.bf16.msra.mxu1 %v2978_v16  ;;  %v2981_v16 = vld [vmem:[%s3485_s10] sm:$0xff]  }
 0x405   : > { %v2828_v63 = vpop.f32.mrb[0].mxu1 }
 0x406   : > { %v1060_v0 = vpop.f32.mrb[1].mxu1 }
 0x407   : > { %v2829_v1 = vpop.f32.mrb[2].mxu1 }
 0x408   : > { %v1063_v2 = vpop.f32.mrb[3].mxu1 }
 0x40e   : > { %v2834_v3 = vpop.f32.mrb[4].mxu1 }
 0x40f   : > { %1444 = vxpose.xlu0.b32.start.end [1/1] (short) (narrow) %v2834_v3, 8  ;;  %v1365_v4 = vpop.f32.mrb[5].mxu1 }
 0x410   : > { %v2835_v5 = vpop.f32.mrb[6].mxu1 }
 0x411   : > { %v1368_v6 = vpop.f32.mrb[7].mxu1 }
 0x412   : > { %1412 = vxpose.xlu1.b32.start.end [1/1] (short) (narrow) %v1368_v6, 8 }
 0x413   : > { %1380 = vxpose.xlu0.b32.start.end [1/1] (short) (narrow) %v1365_v4, 8 }
 0x417   : > { %1476 = vxpose.xlu0.b32.start.end [1/1] (short) (narrow) %v2835_v5, 8 }
 0x41a   : > { %v2840_v7 = vpop.f32.mrb[8].mxu1 }
 0x41b   : > { %1765 = vxpose.xlu0.b32.start.end [1/1] (short) (narrow) %v2840_v7, 8  ;;  %v1686_v8 = vpop.f32.mrb[9].mxu1 }
 0x41c   : > { %v2841_v9 = vpop.f32.mrb[10].mxu1 }
 0x41d   : > { %1797 = vxpose.xlu1.b32.start.end [1/1] (short) (narrow) %v2841_v9, 8  ;;  %v1689_v10 = vpop.f32.mrb[11].mxu1 }
 0x41f   : > { %1701 = vxpose.xlu0.b32.start.end [1/1] (short) (narrow) %v1686_v8, 8 }
 0x421   : > { %1733 = vxpose.xlu1.b32.start.end [1/1] (short) (narrow) %v1689_v10, 8 }
 0x422   : > { %v2846_v11 = vpop.f32.mrb[12].mxu1 }
 0x423   : > { %2086 = vxpose.xlu0.b32.start.end [1/1] (short) (narrow) %v2846_v11, 8  ;;  %v2007_v12 = vpop.f32.mrb[13].mxu1 }
 0x424   : > { %v2847_v13 = vpop.f32.mrb[14].mxu1 }
 0x425   : > { %2118 = vxpose.xlu1.b32.start.end [1/1] (short) (narrow) %v2847_v13, 8  ;;  %v2010_v14 = vpop.f32.mrb[15].mxu1 }
 0x427   : > { %2022 = vxpose.xlu0.b32.start.end [1/1] (short) (narrow) %v2007_v12, 8 }
 0x429   : > { %2054 = vxpose.xlu1.b32.start.end [1/1] (short) (narrow) %v2010_v14, 8 }
 0x42b   : > { %1107 = vxpose.xlu0.b32.start.end [1/1] (short) (narrow) %v1063_v2, 8  ;;  %v2174_v2 = vld [vmem:[%s462_s11 + $0x18] sm:$0xff]  ;;  %s514_s11 = scalar_lea.vmem [#allocation4], %s3374_s13 }
 0x42f   : > { %1139 = vxpose.xlu0.b32.start.end [1/1] (short) (narrow) %v2828_v63, 8 }
 0x48f   : > { %v1460_v15 = vpop.trf.xlu0 }
 0x490   : > { %1516 = vrot.lane.b32.xlu1 %v1460_v15, %s3078_s20 }
 0x492   : > { %v1428_v20 = vpop.trf.xlu1 }
 0x493   : > { %v1396_v17 = vpop.trf.xlu0 }
 0x494   : > { %1512 = vrot.lane.b32.xlu0 %v1396_v17, %s3078_s20 }
 0x497   : > { %v1492_v19 = vpop.trf.xlu0 }
 0x498   : > { %1518 = vrot.lane.b32.xlu1 %v1492_v19, %s3078_s20 }
 0x49b   : > { %v1781_v21 = vpop.trf.xlu0 }
 0x49c   : > { %1514 = vrot.lane.b32.xlu1 %v1428_v20, %s3078_s20  ;;  %s2764_s20 = sshll.u32 (%p3193_p6), %s3051_s24, 3 }
 0x49d   : > { %v1813_v22 = vpop.trf.xlu1  ;;  %s2534_s13 = sadd.s32 (%p3193_p6), %s3047_s23, %s2764_s20 }
 0x49f   : > { %v1717_v23 = vpop.trf.xlu0 }
 0x4a0   : > { %1837 = vrot.lane.b32.xlu1 %v1781_v21, %s3070_s16 }
 0x4a1   : > { %v1749_v24 = vpop.trf.xlu1 }
 0x4a2   : > { %1835 = vrot.lane.b32.xlu0 %v1749_v24, %s3070_s16 }
 0x4a3   : > { %v2102_v25 = vpop.trf.xlu0 }
 0x4a4   : > { %1833 = vrot.lane.b32.xlu1 %v1717_v23, %s3070_s16 }
 0x4a5   : > { %v2134_v26 = vpop.trf.xlu1 }
 0x4a6   : > { %1839 = vrot.lane.b32.xlu0 %v1813_v22, %s3070_s16  ;;  %s3497_s16 = sld [smem:[#allocation8_spill]] (%p3193_p6) }
 0x4a7   : > { %v2038_v27 = vpop.trf.xlu0 }
 0x4a8   : > { %2158 = vrot.lane.b32.xlu1 %v2102_v25, %s3079_s14 }
 0x4a9   : > { %v2070_v28 = vpop.trf.xlu1 }
 0x4aa   : > { %2160 = vrot.lane.b32.xlu0 %v2134_v26, %s3079_s14 }
 0x4ab   : > { %v1123_v29 = vpop.trf.xlu0 }
 0x4ac   : > { %2154 = vrot.lane.b32.xlu1 %v2038_v27, %s3079_s14  ;;  %1205 = vst.msk [vmem:[#allocation2 + $0x8] sm:$0xff] %vm1203_vm8, %v1123_v29 }
 0x4ae   : > { %2156 = vrot.lane.b32.xlu0 %v2070_v28, %s3079_s14  ;;  %s2765_s14 = sshll.u32 (%p3193_p6), %s2534_s13, 3 }
 0x4af   : > { %v1155_v30 = vpop.trf.xlu0  ;;  %s2536_s19 = scalar_lea.vmem (%p3193_p6), %s3497_s16, %s2765_s14 }
 0x4b0   : > { %1206 = vst.msk [vmem:[#allocation2 + $0x10] sm:$0xff] %vm1203_vm8, %v1155_v30  ;;  %v2979_v30 = vld [vmem:[%s3483_s8] sm:$0xff]  }
 0x4b1   : > { %2856 = vmatprep.subr.bf16.mxu1 %v2979_v30 }
 0x4cc   : > { %1171 = vxpose.xlu0.b32.start.end [1/1] (short) (narrow) %v2829_v1, 8 }
 0x4d5   : > { %1075 = vxpose.xlu1.b32.start.end [1/1] (short) (narrow) %v1060_v0, 8 }
 0x502   : > { %v1517_v32 = vpop.permute.xlu1 %1516 }
 0x503   : > { %1527 = vst.msk [vmem:[#allocation2 + $0x10] sm:$0xff] %vm1524_vm9, %v1517_v32 }
 0x506   : > { %v1513_v35 = vpop.permute.xlu0 %1512 }
 0x50a   : > { %v1519_v33 = vpop.permute.xlu1 %1518 }
 0x50e   : > { %v1515_v34 = vpop.permute.xlu1 %1514 }
 0x50f   : > { %1526 = vst.msk [vmem:[#allocation2 + $0x8] sm:$0xff] %vm1524_vm9, %v1515_v34 }
 0x512   : > { %v1838_v18 = vpop.permute.xlu1 %1837 }
 0x513   : > { %1848 = vst.msk [vmem:[#allocation2 + $0x10] sm:$0xff] %vm1845_vm10, %v1838_v18 }
 0x514   : > { %v1836_v36 = vpop.permute.xlu0 %1835 }
 0x515   : > { %1847 = vst.msk [vmem:[#allocation2 + $0x8] sm:$0xff] %vm1845_vm10, %v1836_v36 }
 0x516   : > { %v1834_v37 = vpop.permute.xlu1 %1833 }
 0x518   : > { %v1840_v38 = vpop.permute.xlu0 %1839 }
 0x51a   : > { %v2159_v39 = vpop.permute.xlu1 %2158 }
 0x51b   : > { %2169 = vst.msk [vmem:[#allocation2 + $0x10] sm:$0xff] %vm2166_vm11, %v2159_v39 }
 0x51c   : > { %v2161_v40 = vpop.permute.xlu0 %2160 }
 0x51e   : > { %v2155_v43 = vpop.permute.xlu1 %2154 }
 0x520   : > { %v2157_v41 = vpop.permute.xlu0 %2156 }
 0x521   : > { %2168 = vst.msk [vmem:[#allocation2 + $0x8] sm:$0xff] %vm2166_vm11, %v2157_v41 }
 0x522   : > { %v2177_v49 = vld [vmem:[#allocation2 + $0x10] sm:$0xff] }
 0x528   : > { %v2176_v47 = vld [vmem:[#allocation2 + $0x8] sm:$0xff] }
 0x54c   : > { %v1187_v42 = vpop.trf.xlu0 }
 0x54d   : > { %1207 = vst.msk [vmem:[#allocation2 + $0x18] sm:$0xff] %vm1203_vm8, %v1187_v42 }
 0x54e   : > { %1528 = vst.msk [vmem:[#allocation2 + $0x18] sm:$0xff] %vm1524_vm9, %v1519_v33 }
 0x54f   : > { %1849 = vst.msk [vmem:[#allocation2 + $0x18] sm:$0xff] %vm1845_vm10, %v1840_v38 }
 0x550   : > { %2170 = vst.msk [vmem:[#allocation2 + $0x18] sm:$0xff] %vm2166_vm11, %v2161_v40 }
 0x555   : > { %v1091_v44 = vpop.trf.xlu1 }
 0x556   : > { %1204 = vst.msk [vmem:[#allocation2] sm:$0xff] %vm1203_vm8, %v1091_v44 }
 0x557   : > { %1525 = vst.msk [vmem:[#allocation2] sm:$0xff] %vm1524_vm9, %v1513_v35  ;;  %v2178_v45 = vld [vmem:[#allocation2 + $0x18] sm:$0xff] }
 0x558   : > { %1846 = vst.msk [vmem:[#allocation2] sm:$0xff] %vm1845_vm10, %v1834_v37  ;;  %v2180_v50 = vpack.c.bf16 %v2178_v45, %v2177_v49  ;;  %v2749_v45 = vld [vmem:[%s3481_s6] ss:$0 sm:$0xff] }
 0x559   : > { %2167 = vst.msk [vmem:[#allocation2] sm:$0xff] %vm2166_vm11, %v2155_v43 }
 0x560   : > { %v2175_v46 = vld [vmem:[#allocation2] sm:$0xff] }
 0x561   : > { %v2179_v48 = vpack.c.bf16 %v2176_v47, %v2175_v46 }
 0x563   : > { %2852 = vmatprep.mubr.msk.bf16.mxu1 %vm632_vm2, %v2179_v48 }
 0x564   : > { %2853 = vmatmul.mubr.msk.bf16.vlgmr.msra.gmra.mrb[16].mxu1 %vm632_vm2, %v2180_v50 }
 0x565   : > { %2857 = vmatpush3.bf16.msra.mxu1 %v2979_v30 }
 0x566   : > { %2858 = vmatprep.subr.bf16.mxu1 %v2980_v31 }
 0x569   : > { %2859 = vmatpush3.bf16.msra.mxu1 %v2980_v31 }
 0x56a   : > { %2864 = vmatprep.subr.bf16.mxu1 %v2981_v16 }
 0x637   : > { %v2854_v53 = vpop.f32.mrb[16].mxu1 }
 0x638   : > { %v2253_v54 = vadd.f32 %v2854_v53, %v2744_v51  ;;  %v2244_v56 = vpop.f32.mrb[17].mxu1 }
 0x639   : > { %v2245_v57 = vadd.f32 %v2744_v51, %v2244_v56  ;;  %v2855_v58 = vpop.f32.mrb[18].mxu1 }
 0x63a   : > { %v3380_v59 = vadd.f32 %v2253_v54, %v2173_v52  ;;  %v2247_v61 = vpop.f32.mrb[19].mxu1  ;;  %v2256_v0 = vadd.f32 %v2855_v58, %v2744_v51 }
 0x63b   : > { %v3382_v62 = vadd.f32 %v2245_v57, %v2171_v55  ;;  %v2248_v63 = vadd.f32 %v2744_v51, %v2247_v61  ;;  %v2750_v51 = vld [vmem:[%s3482_s7] ss:$0 sm:$0xff] }
 0x63c   : > { %v2271_v1 = vsel %vm632_vm2, %v3380_v59, 0.0  ;;  %v3392_v6 = vadd.f32 %v2256_v0, %v2174_v2  ;;  %v2983_v2 = vld [vmem:[%s3485_s10 + $0x10] sm:$0xff]  }
 0x63d   : > { %v3386_v3 = vadd.f32 %v2248_v63, %v2172_v60  ;;  %2272 = vadd.xlane.f32.xlu1 %v2271_v1  ;;  %v2265_v4 = vsel %vm632_vm2, %v3382_v62, 0.0  ;;  %v2982_v1 = vld [vmem:[%s3485_s10 + $0x8] sm:$0xff]  }
 0x63e   : > { %2266 = vadd.xlane.f32.xlu0 %v2265_v4  ;;  %v2274_v7 = vsel %vm632_vm2, %v3392_v6, 0.0  ;;  %v2984_v4 = vld [vmem:[%s3485_s10 + $0x18] sm:$0xff]  }
 0x63f   : > { %v2268_v5 = vsel %vm632_vm2, %v3386_v3, 0.0 }
 0x641   : > { %2269 = vadd.xlane.f32.xlu1 %v2268_v5  ;;  %v2751_v5 = vld [vmem:[%s3484_s9] ss:$0 sm:$0xff] }
 0x645   : > { %2275 = vadd.xlane.f32.xlu1 %v2274_v7 }
 0x6ca   : > { %v2273_v8 = vpop.xlane.xlu1 %2272 }
 0x6cb   : > { %v2280_v9 = vmul.f32 0.03125, %v2273_v8  ;;  %v2267_v10 = vpop.xlane.xlu0 %2266 }
 0x6cc   : > { %v2278_v11 = vmul.f32 0.03125, %v2267_v10 }
 0x6cd   : > { %v2284_v12 = vsub.f32 %v3380_v59, %v2280_v9 }
 0x6ce   : > { %v2282_v13 = vsub.f32 %v3382_v62, %v2278_v11  ;;  %v2270_v14 = vpop.xlane.xlu1 %2269 }
 0x6cf   : > { %v2279_v15 = vmul.f32 0.03125, %v2270_v14  ;;  %v2288_v22 = vmul.f32 %v2284_v12, %v2284_v12 }
 0x6d0   : > { %v2286_v17 = vmul.f32 %v2282_v13, %v2282_v13 }
 0x6d1   : > { %v2283_v19 = vsub.f32 %v3386_v3, %v2279_v15  ;;  %v2296_v27 = vsel %vm632_vm2, %v2288_v22, 0.0 }
 0x6d2   : > { %v2276_v20 = vpop.xlane.xlu1 %2275  ;;  %v2290_v21 = vsel %vm632_vm2, %v2286_v17, 0.0 }
 0x6d3   : > { %v2281_v23 = vmul.f32 0.03125, %v2276_v20  ;;  %2291 = vadd.xlane.f32.xlu0 %v2290_v21  ;;  %v2287_v24 = vmul.f32 %v2283_v19, %v2283_v19 }
 0x6d5   : > { %v2285_v25 = vsub.f32 %v3392_v6, %v2281_v23  ;;  %v2293_v26 = vsel %vm632_vm2, %v2287_v24, 0.0  ;;  %v2756_v23 = vld [vmem:[%s3495_s28] ss:$0 sm:$0xff] }
 0x6d6   : > { %2294 = vadd.xlane.f32.xlu1 %v2293_v26 }
 0x6d7   : > { %2297 = vadd.xlane.f32.xlu0 %v2296_v27  ;;  %v2289_v28 = vmul.f32 %v2285_v25, %v2285_v25 }
 0x6d9   : > { %v2299_v29 = vsel %vm632_vm2, %v2289_v28, 0.0 }
 0x6da   : > { %2300 = vadd.xlane.f32.xlu1 %v2299_v29 }
 0x760   : > { %v2292_v32 = vpop.xlane.xlu0 %2291 }
 0x761   : > { %v2302_v33 = vmul.f32 0.03125, %v2292_v32 }
 0x763   : > { %v2306_v34 = vadd.f32 1e-05, %v2302_v33  ;;  %v2295_v35 = vpop.xlane.xlu1 %2294 }
 0x764   : > { %v2303_v18 = vmul.f32 0.03125, %v2295_v35  ;;  %v2298_v36 = vpop.xlane.xlu0 %2297 }
 0x765   : > { %3001 = vrsqrt.f32 %v2306_v34  ;;  %v2304_v37 = vmul.f32 0.03125, %v2298_v36 }
 0x766   : > { %v2307_v38 = vadd.f32 1e-05, %v2303_v18 }
 0x767   : > { %v2308_v39 = vadd.f32 1e-05, %v2304_v37  ;;  %v2301_v40 = vpop.xlane.xlu1 %2300 }
 0x768   : > { %3003 = vrsqrt.f32 %v2307_v38  ;;  %v2305_v41 = vmul.f32 0.03125, %v2301_v40 }
 0x769   : > { %3005 = vrsqrt.f32 %v2308_v39 }
 0x76a   : > { %v2309_v42 = vadd.f32 1e-05, %v2305_v41 }
 0x76c   : > { %3007 = vrsqrt.f32 %v2309_v42 }
 0x76f   : > { %v3002_v43 = vpop.eup %3001 }
 0x770   : > { %v2314_v44 = vmul.f32 %v3002_v43, %v2282_v13 }
 0x772   : > { %v3004_v46 = vpop.eup %3003  ;;  %v2324_v49 = vmul.f32 %v2749_v45, %v2314_v44 }
 0x773   : > { %v3006_v47 = vpop.eup %3005  ;;  %v2315_v48 = vmul.f32 %v3004_v46, %v2283_v19 }
 0x774   : > { %v2316_v50 = vmul.f32 %v3006_v47, %v2284_v12  ;;  %v2334_v56 = vadd.f32 %v2750_v51, %v2324_v49 }
 0x775   : > { %v2325_v52 = vmul.f32 %v2749_v45, %v2315_v48 }
 0x776   : > { %v3008_v53 = vpop.eup %3007  ;;  %v2326_v54 = vmul.f32 %v2749_v45, %v2316_v50 }
 0x777   : > { %v2317_v55 = vmul.f32 %v3008_v53, %v2285_v25  ;;  %v2335_v57 = vadd.f32 %v2750_v51, %v2325_v52 }
 0x778   : > { %v2336_v61 = vadd.f32 %v2750_v51, %v2326_v54 }
 0x779   : > { %v2327_v58 = vmul.f32 %v2749_v45, %v2317_v55  ;;  %v2338_v60 = vpack.c.bf16 %v2335_v57, %v2334_v56 }
 0x77b   : > { %2860 = vmatprep.mubr.msk.bf16.mxu1 %vm632_vm2, %v2338_v60  ;;  %v2337_v63 = vadd.f32 %v2750_v51, %v2327_v58 }
 0x77d   : > { %v2339_v0 = vpack.c.bf16 %v2337_v63, %v2336_v61 }
 0x77f   : > { %2861 = vmatmul.mubr.msk.bf16.vlgmr.msra.gmra.mrb[20].mxu1 %vm632_vm2, %v2339_v0 }
 0x780   : > { %2865 = vmatpush3.bf16.msra.mxu1 %v2981_v16 }
 0x781   : > { %2866 = vmatprep.subr.bf16.mxu1 %v2982_v1 }
 0x784   : > { %2867 = vmatpush3.bf16.msra.mxu1 %v2982_v1 }
 0x785   : > { %2868 = vmatprep.subr.bf16.mxu1 %v2983_v2 }
 0x788   : > { %2869 = vmatpush3.bf16.msra.mxu1 %v2983_v2 }
 0x789   : > { %2870 = vmatprep.subr.bf16.mxu1 %v2984_v4 }
 0x78c   : > { %2871 = vmatpush3.bf16.msra.mxu1 %v2984_v4 }
 0x852   : > { %v2862_v7 = vpop.f32.mrb[20].mxu1 }
 0x853   : > { %v2412_v8 = vadd.f32 %v2862_v7, %v2751_v5  ;;  %v2403_v9 = vpop.f32.mrb[21].mxu1 }
 0x854   : > { %v2404_v10 = vadd.f32 %v2751_v5, %v2403_v9  ;;  %v2863_v11 = vpop.f32.mrb[22].mxu1 }
 0x855   : > { %v2415_v12 = vadd.f32 %v2863_v11, %v2751_v5  ;;  %v2406_v13 = vpop.f32.mrb[23].mxu1  ;;  %v2420_v15 = vmax.f32 %v2412_v8, 0.0 }
 0x856   : > { %v2407_v14 = vadd.f32 %v2751_v5, %v2406_v13  ;;  %v2418_v19 = vmax.f32 %v2404_v10, 0.0 }
 0x857   : > { %v2421_v17 = vmax.f32 %v2415_v12, 0.0 }
 0x858   : > { %v2419_v20 = vmax.f32 %v2407_v14, 0.0 }
 0x859   : > { %v2423_v21 = vpack.c.bf16 %v2421_v17, %v2420_v15 }
 0x85a   : > { %v2422_v22 = vpack.c.bf16 %v2419_v20, %v2418_v19 }
 0x85c   : > { %2872 = vmatprep.mubr.msk.bf16.mxu1 %vm636_vm4, %v2422_v22 }
 0x85d   : > { %2873 = vmatmul.mubr.msk.bf16.vlgmr.msra.gmra.mrb[24].mxu1 %vm636_vm4, %v2423_v21 }
 0x930   : > { %v2874_v24 = vpop.f32.mrb[24].mxu1 }
 0x931   : > { %v2512_v25 = vadd.f32 %v2874_v24, %v2756_v23  ;;  %v2503_v26 = vpop.f32.mrb[25].mxu1 }
 0x932   : > { %v2504_v27 = vadd.f32 %v2756_v23, %v2503_v26  ;;  %v2875_v28 = vpop.f32.mrb[26].mxu1  ;;  %2532 = sbr.rel (!%p3193_p6) target bundleno = 2369 (0x941), region = 110 }
 0x933   : > { %v2520_v29 = vadd.f32 %v2512_v25, %v3380_v59  ;;  %v2515_v30 = vadd.f32 %v2875_v28, %v2756_v23  ;;  %v2506_v31 = vpop.f32.mrb[27].mxu1 }
 0x934   : > { %v2518_v16 = vadd.f32 %v2504_v27, %v3382_v62  ;;  %v2507_v32 = vadd.f32 %v2756_v23, %v2506_v31 }
 0x935   : > { %2524 = vst.msk [vmem:[%s514_s11 + $0x10] sm:$0xff] %vm632_vm2, %v2520_v29  ;;  %v2521_v33 = vadd.f32 %v2515_v30, %v3392_v6 }
 0x936   : > { %2522 = vst.msk [vmem:[%s514_s11] sm:$0xff] %vm632_vm2, %v2518_v16  ;;  %v2519_v34 = vadd.f32 %v2507_v32, %v3386_v3 }
 0x937   : > { %2525 = vst.msk [vmem:[%s514_s11 + $0x18] sm:$0xff] %vm632_vm2, %v2521_v33 }
 0x938   : > { %2523 = vst.msk [vmem:[%s514_s11 + $0x8] sm:$0xff] %vm632_vm2, %v2519_v34 }
 0x93c   : > { %v2574_v35 = vld [vmem:[%s514_s11 + $0x10] sm:$0xff] }
 0x93d   : > { %v2570_v59 = vld [vmem:[%s514_s11] sm:$0xff]  ;;  %2575 = vst [vmem:[%s2536_s19 + $0x20] sm:$0xff] %v2574_v35 }
 0x93e   : > { %v2576_v18 = vld [vmem:[%s514_s11 + $0x18] sm:$0xff]  ;;  %2571 = vst [vmem:[%s2536_s19] sm:$0xff] %v2570_v59 }
 0x93f   : > { %v2572_v62 = vld [vmem:[%s514_s11 + $0x8] sm:$0xff]  ;;  %2577 = vst [vmem:[%s2536_s19 + $0x30] sm:$0xff] %v2576_v18 }
 0x940   : > { %2573 = vst [vmem:[%s2536_s19 + $0x10] sm:$0xff] %v2572_v62 }
 0x941 PF: > { %s22_s27 = sadd.s32 1, %s3063_s27   ;;  %s3498_s30 = sld [smem:[#allocation5_spill]] }
 0x942   : > { %p19_p0 = scmp.ge.s32.totalorder %s22_s27, 6   ;;  %s3499_s21 = smov %s3043_s22 }
 0x943   : > { %s3500_s22 = smov %s3201_s18  ;;  %s3501_s23 = smov %s3055_s25 }
 0x944   : > { %s3502_s24 = smov %s3059_s26  ;;  %s3504_s26 = smov %s3510_s29 }
 0x945   :  { %21 = sbr.rel (!%p19_p0) target bundleno = 7 (0x7), region = 185 }
 0x947   : > { %s3503_s25 = smov %s3498_s30 }

// kernel: special_encoder.3
= control target key start
LH: loop header
LB: loop body
LE: loop exit
PB: predicated region body
PF: predicated region fallthrough
CT: control target
= control target key end

     0   :  { %s3646_s0 = inlined_call_operand.vmem [shape: bf16[2,4,16,32], index: 0, kind: input, shape index: {}]   ;;  %s3647_s1 = inlined_call_operand.vmem [shape: bf16[2,16,16,16], index: 1, kind: input, shape index: {}]   ;;  %s3648_s2 = inlined_call_operand.hbm [shape: f32[2,4,16,32], index: 2, kind: input, shape index: {}, may-alias: {2,12}]   ;;  %s3649_s3 = inlined_call_operand.vmem [shape: bf16[16,4], index: 3, kind: input, shape index: {}]   ;;  %s3650_s4 = inlined_call_operand.vmem [shape: bf16[32,32], index: 4, kind: input, shape index: {}]   ;;  %s3651_s5 = inlined_call_operand.vmem [shape: f32[1,32], index: 5, kind: input, shape index: {}]   ;;  %s3652_s6 = inlined_call_operand.vmem [shape: f32[1,32], index: 6, kind: input, shape index: {}]   ;;  %s3653_s7 = inlined_call_operand.vmem [shape: f32[1,32], index: 7, kind: input, shape index: {}]   ;;  %s3654_s8 = inlined_call_operand.vmem [shape: bf16[32,64], index: 8, kind: input, shape index: {}]   ;;  %s3655_s9 = inlined_call_operand.vmem [shape: f32[1,64], index: 9, kind: input, shape index: {}]   ;;  %s3656_s10 = inlined_call_operand.vmem [shape: bf16[64,32], index: 10, kind: input, shape index: {}]   ;;  %s3657_s11 = inlined_call_operand.vmem [shape: f32[1,32], index: 11, kind: input, shape index: {}]   ;;  %s3658_s12 = inlined_call_operand.hbm [shape: f32[2,4,16,32], index: 12, kind: output, shape index: {}, may-alias: {2,12}]  }
   0x1   :  { %3667 = sst [smem:[#allocation12_spill]] %s3652_s6 }
   0x2   :  { %3668 = sst [smem:[#allocation13_spill]] %s3653_s7 }
   0x3   :  { %3669 = sst [smem:[#allocation14_spill]] %s3654_s8 }
   0x4   :  { %3670 = sst [smem:[#allocation15_spill]] %s3655_s9 }
   0x5   :  { %3671 = sst [smem:[#allocation16_spill]] %s3656_s10 }
   0x6   :  { %3672 = sst [smem:[#allocation17_spill]] %s3657_s11 }
   0x7   :  { %3673 = sst [smem:[#allocation18_spill]] %s3658_s12 }
   0x8   :  { %17 = vsyncpa [#allocation4], 0 }
   0x9   :  { %19 = vsyncpa [#allocation4 + $0x1], 0 }
   0xa   :  { %20 = vsyncpa [#allocation5], 0 }
   0xb   :  { %22 = vsyncpa [#allocation5 + $0x1], 0  ;;  %s3206_s21 = smov 0   ;;  %s3208_s22 = smov 0  }
   0xc   :  { %s3210_s23 = smov 0   ;;  %s3212_s24 = smov 0  }
   0xd   :  { %s3214_s25 = smov 0   ;;  %s3216_s26 = smov 0  }
   0xe   :  { %s3218_s27 = smov 0   ;;  %s3220_s28 = smov 0  }
   0xf LB: > { %3674 = sst [smem:[#allocation9_spill]] %s3089_s21  ;;  %s2639_s29 = sadd.s32 4294967295, %s3117_s28   ;;  %s3117_s28 = sphi %s3220_s28, %s28_s28   ;;  %s3113_s27 = sphi %s3218_s27, %s3701_s27   ;;  %s3109_s26 = sphi %s3216_s26, %s3700_s26   ;;  %s3105_s25 = sphi %s3214_s25, %s3699_s25   ;;  %s3101_s24 = sphi %s3212_s24, %s3698_s24   ;;  %s3097_s23 = sphi %s3210_s23, %s3697_s23   ;;  %s3093_s22 = sphi %s3208_s22, %s3696_s22   ;;  %s3089_s21 = sphi %s3206_s21, %s3695_s21  }
  0x10   : > { %s2640_s30 = sadd.s32 4294967294, %s3117_s28   ;;  %s37_s13 = sadd.s32 1, %s3109_s26 }
  0x11   : > { %s40_s14 = sadd.s32 1, %s3113_s27  ;;  %p38_p0 = scmp.ge.s32.totalorder %s37_s13, 2 }
  0x12   : > { %s103_s15 = sadd.s32 1, %s3097_s23  ;;  %p110_p1 = scmp.ne.s32.totalorder %s3097_s23, %s3093_s22 }
  0x13   : > { %p111_p2 = scmp.eq.s32.totalorder %s3117_s28, 0  ;;  %s3703_s13 = smov (%p38_p0, %s37_s13), 0 }
  0x14   : > { %3675 = sst [smem:[#allocation10_spill]] %s3703_s13  ;;  %s3705_s14 = smov (!%p38_p0, %s40_s14), %s3113_s27 }
  0x15   : > { %s99_s16 = ssub.s32 %s3109_s26, %s3703_s13  ;;  %p3259_p3 = por %p111_p2, %p110_p1 }
  0x16   : > { %p42_p4 = scmp.ge.s32.totalorder %s3705_s14, 2  ;;  %p116_p5 = scmp.ne.s32.totalorder %s3093_s22, %s3089_s21 }
  0x17   : > { %p117_p6 = scmp.eq.s32.totalorder %s2639_s29, 0  ;;  %p331_p7 = scmp.eq.s32.totalorder %s2639_s29, 3 }
  0x18   : > { %s3707_s14 = smov (%p42_p4, %s3705_s14), 0  ;;  %p337_p10 = scmp.eq.s32.totalorder %s2640_s30, 3 }
  0x19   : > { %3677 = sst [smem:[#allocation11_spill]] %s3707_s14  ;;  %p3267_p8 = por %p117_p6, %p116_p5 }
  0x1a   : > { %p3271_p9 = por %p331_p7, %p110_p1  ;;  %s98_s20 = ssub.s32 %s3113_s27, %s3707_s14 }
  0x1b   : > { %s100_s13 = sor.u32 %s99_s16, %s98_s20  ;;  %p3277_p12 = por %p337_p10, %p116_p5 }
  0x1c   : > { %s3679_s19 = scalar_select %p3271_p9, 1, 0 }
  0x1d   : > { %p101_p11 = scmp.eq.s32.totalorder %s100_s13, 0  ;;  %p2845_p13 = scmp.lt.s32.totalorder %s3117_s28, 4 }
  0x1e   : > { %s3680_s21 = scalar_select %p3277_p12, 1, 0 }
  0x1f   : > { %s406_s29 = sand.u32 1, %s3097_s23   ;;  %s2644_s9 = sshll.u32 %s3113_s27, 3 }
  0x20   : > { %s3284_s12 = scalar_select %p101_p11, %s3097_s23, %s103_s15  }
  0x21   : > { %s2643_s11 = sshll.u32 %s406_s29, 5  ;;  %s415_s7 = sadd.s32 %s3109_s26, %s2644_s9 }
  0x22   : > { %s410_s6 = scalar_lea.vmem [#allocation3], %s2643_s11  ;;  %s2645_s8 = sshll.u32 %s415_s7, 7 }
  0x23   : > { %s418_s10 = sshll.u32 %s410_s6, 4  ;;  %s3293_s13 = scalar_lea.hbm %s3648_s2, %s2645_s8  ;;  %s3288_s10 = int_to_ptr.vmem [resolvable:$true] %s418_s10 }
  0x24   : > { %p3297_p0 = pnand %p2845_p13, %p3259_p3  ;;  %s3301_s6 = scalar_lea.sflag [#allocation4], %s406_s29 }
  0x25   : > { %s2989_s7 = scalar_lea.hbm %s3293_s13, 512  ;;  %s2994_s11 = scalar_lea.hbm %s3648_s2, 2048 }
  0x26   : > { %p2990_p1 = scmp.ne.s32.totalorder %s3293_s13, %s2989_s7  ;;  %p2991_p2 = pneg %p3297_p0 }
  0x27   : > { %p2995_p3 = scmp.lt.u32.totalorder %s3293_s13, %s3648_s2  ;;  %p2996_p6 = scmp.lt.u32.totalorder %s2994_s11, %s2989_s7 }
  0x28   : > { %p2992_p4 = pnand %p2991_p2, %p2990_p1  ;;  %p2998_p10 = scmp.lt.u32.totalorder %s2989_s7, %s3293_s13 }
  0x29   : > { %p2997_p7 = por %p2996_p6, %p2995_p3 }
  0x2a   : > { %p2993_p5 = pneg %p2992_p4 }
  0x2b   : > { %p2999_p11 = por %p2998_p10, %p2997_p7 }
  0x2d   : > { %p3000_p13 = pnand %p2999_p11, %p2993_p5 }
  0x2f   : > { %3003 = shalt.err (!%p3000_p13)
}
  0x30   : > { %s3004_s17 = scalar_lea.vmem %s3288_s10, 512  ;;  %s3119_s20 = smov [#allocation3]  }
  0x31   : > { %p3005_p1 = scmp.ne.s32.totalorder %s3288_s10, %s3004_s17  ;;  %s3009_s29 = sshll.u32 %s3119_s20, 4  ;;  %s3010_s29 = int_to_ptr.vmem [resolvable:$false] %s3009_s29 }
  0x32   : > { %s3011_s30 = scalar_lea.vmem %s3010_s29, 1024  ;;  %p3012_p9 = scmp.lt.s32.totalorder %s3288_s10, %s3010_s29 }
  0x33   : > { %p3007_p4 = pnand %p3005_p1, %p2991_p2  ;;  %p3013_p3 = scmp.lt.s32.totalorder %s3011_s30, %s3004_s17 }
  0x35   : > { %p3008_p12 = pneg %p3007_p4  ;;  %p3014_p6 = por %p3013_p3, %p3012_p9 }
  0x37   : > { %p3015_p7 = pnand %p3014_p6, %p3008_p12 }
  0x39   : > { %3018 = shalt.err (!%p3015_p7)
}
  0x3a   : > { %s3120_s7 = smov 256   ;;  %s3121_s8 = smov 128  }
  0x3b   : > { %s3122_s9 = smov 8   ;;  %p2646_p2 = scmp.ge.s32.totalorder %s3117_s28, 1 }
  0x3c   : > { %2840 = dma.hbm_to_vmem [thread:$0]  (!%p3297_p0), %s3293_s13, 512, %s3288_s10, %s3301_s6, %s3120_s7, %s3121_s8, %s3122_s9  }
  0x3d   : > { %p426_p5 = scmp.lt.s32.totalorder %s3117_s28, 5 }
  0x3f   : > { %p427_p10 = pnand %p2646_p2, %p426_p5 }
  0x40   : > { %s3332_s11 = sand.u32 (!%p427_p10), 1, %s3093_s22  }
  0x41   : > { %430 = sbr.rel (%p427_p10) target bundleno = 2411 (0x96b), region = 68  ;;  %s3666_s14 = sshll.u32 (!%p427_p10), %s3332_s11, 5 }
  0x42   : > { %s433_s16 = scalar_lea.sflag (!%p427_p10), [#allocation4], %s3332_s11  ;;  %s3338_s17 = scalar_lea.vmem (!%p427_p10), [#allocation3], %s3666_s14 }
  0x48   : > { %3080 = dma.done.wait (%p3267_p8), %s433_s16, 512  }
  0x49   : > { %3082 = vsyncadd (%p3267_p8), %s433_s16, 4294966784  ;;  %p492_p9 = scmp.lt.s32.totalorder %s3105_s25, 1  ;;  %s2651_s10 = sshll.u32 %s3101_s24, 3  ;;  %v532_v0 = vlaneseq  ;;  %v3123_v1 = vmov 0.0   ;;  %vm3124_vm0 = vmmov 0   ;;  %v2932_v12 = vld [vmem:[%s3649_s3] sm:$0xff]  }
  0x4a   : > { %2757 = vmatprep.subr.bf16.mxu0 %v3123_v1  ;;  %p500_p12 = scmp.lt.s32.totalorder %s2651_s10, 15  ;;  %2773 = vmatprep.mubr.msk.bf16.mxu0 %vm3124_vm0, %v3123_v1  ;;  %v3125_v2 = vmov 1983009808   ;;  %v3126_v5 = vmov 1934713408   ;;  %v527_v7 = vcombine.low %v3123_v1, %v3123_v1  ;;  %v528_v10 = vcombine.high %v3123_v1, %v3123_v1  ;;  %s3131_s20 = smov 96  }
  0x4b   : > { %s493_s13 = scalar_select %p492_p9, %s3105_s25, 1  ;;  %v530_v3 = vunpack.c.l.s4 %v3125_v2  ;;  %v533_v4 = vshrl.u32 %v532_v0, 7  ;;  %v546_v6 = vunpack.c.l.s4 %v3126_v5  ;;  %vm607_vm1 = vcmask 130048   ;;  %627 = vxpose.xlu0.c.b16.start.end [1/1] (short) (narrow) %v2932_v12, 16 }
  0x4c   : > { %s3709_s10 = smov (!%p500_p12, %s2651_s10), 15  ;;  %s3132_s29 = smov 80   ;;  %vm609_vm2 = vcmask 261120   ;;  %vm611_vm3 = vcmask 392192   ;;  %vm613_vm4 = vcmask 523264   ;;  %vm615_vm5 = vcmask 654336  }
  0x4d   : > { %s2721_s18 = sshll.u32 %s493_s13, 5  ;;  %v531_v8 = vunpack.c.0.s8 %v530_v3  ;;  %v547_v9 = vunpack.c.0.s8 %v546_v6  ;;  %s2652_s15 = sshll.u32 %s3709_s10, 1  ;;  %vm617_vm6 = vcmask 785408   ;;  %vm619_vm7 = vcmask 916480  }
  0x4e   : > { %s504_s6 = sadd.s32 %s2721_s18, %s2652_s15  ;;  %s3361_s8 = scalar_lea.vmem %s3646_s0, %s2721_s18  ;;  %vm1180_vm8 = vcmask 64512   ;;  %vm1501_vm9 = vcmask 130112   ;;  %vm1822_vm10 = vcmask 195712   ;;  %vm2143_vm11 = vcmask 261312  }
  0x4f   : > { %v3353_v11 = vsub.s32 %v531_v8, %v533_v4  ;;  %s2654_s9 = sshll.u32 %s504_s6, 2  ;;  %v3369_v14 = vsub.s32 %v547_v9, %v533_v4  ;;  %s3127_s10 = smov 32  }
  0x50   : > { %s3366_s14 = scalar_lea.vmem %s3647_s1, %s2654_s9  ;;  %s3128_s18 = smov 64  }
  0x51   : > { %v535_v13 = vrot.slane %v527_v7, %v3353_v11  ;;  %v542_v15 = vrot.slane %v528_v10, %v3353_v11  ;;  %v2933_v16 = vld [vmem:[%s3366_s14] sm:$0xff]   ;;  %v2934_v21 = vld [vmem:[%s3366_s14 + $0x8] sm:$0xff]   ;;  %v2935_v24 = vld [vmem:[%s3366_s14 + $0x10] sm:$0xff]   ;;  %s3129_s15 = smov 16   ;;  %s3130_s6 = smov 48  }
  0x52   : > { %v687_v20 = vsel %vm607_vm1, %v2933_v16, 0  ;;  %v2936_v25 = vld [vmem:[%s3366_s14 + $0x18] sm:$0xff]   ;;  %v690_v29 = vsel %vm607_vm1, %v2934_v21, 0  ;;  %v693_v30 = vsel %vm607_vm1, %v2935_v24, 0  ;;  %s3133_s30 = smov 112   ;;  %v2937_v36 = vld [vmem:[%s3366_s14 + $0x20] sm:$0xff]  }
  0x53   : > { %v544_v17 = vcombine.high %v535_v13, %v535_v13  ;;  %v543_v18 = vcombine.low %v535_v13, %v535_v13  ;;  %v559_v19 = vcombine.low %v542_v15, %v542_v15  ;;  %2758 = vmatpush3.bf16.xpose.msra.mxu0 %v687_v20  ;;  %v560_v28 = vcombine.high %v542_v15, %v542_v15  ;;  %v2938_v38 = vld [vmem:[%s3366_s14 + $0x28] sm:$0xff]   ;;  %v2939_v40 = vld [vmem:[%s3366_s14 + $0x30] sm:$0xff]   ;;  %v2940_v42 = vld [vmem:[%s3366_s14 + $0x38] sm:$0xff]   ;;  %s3134_s14 = smov 120   ;;  %s3135_s7 = smov 104  }
  0x54   : > { %2759 = vmatprep.subr.bf16.mxu0 %v3123_v1  ;;  %v696_v31 = vsel %vm607_vm1, %v2936_v25, 0  ;;  %v699_v37 = vsel %vm607_vm1, %v2937_v36, 0  ;;  %v702_v39 = vsel %vm607_vm1, %v2938_v38, 0  ;;  %v705_v41 = vsel %vm607_vm1, %v2939_v40, 0  ;;  %v2942_v36 = vld [vmem:[%s3361_s8 + $0x8] sm:$0xff]   ;;  %v2945_v38 = vld [vmem:[%s3361_s8 + $0x18] sm:$0xff]  }
  0x55   : > { %v558_v22 = vrot.slane %v544_v17, %v3369_v14  ;;  %v551_v23 = vrot.slane %v543_v18, %v3369_v14  ;;  %v567_v26 = vrot.slane %v559_v19, %v3369_v14  ;;  %v574_v33 = vrot.slane %v560_v28, %v3369_v14  ;;  %v2947_v40 = vld [vmem:[%s3361_s8 + $0x8] sm:$0xff]   ;;  %s3137_s9 = smov 24   ;;  %s3683_s16 = sld [smem:[#allocation16_spill]] }
  0x56   : > { %v708_v43 = vsel %vm607_vm1, %v2940_v42, 0  ;;  %v2950_v42 = vld [vmem:[%s3361_s8 + $0x18] sm:$0xff]   ;;  %p3690_p0 = scmp.ne.s32.totalorder %s3679_s19, 0 }
  0x57   : > { %584 = vrot.lane.b32.xlu1 %v558_v22, %s3127_s10  ;;  %v575_v27 = vcombine.high %v551_v23, %v3123_v1  ;;  %v576_v32 = vcombine.high %v558_v22, %v3123_v1  ;;  %v577_v34 = vcombine.high %v567_v26, %v3123_v1  ;;  %v578_v35 = vcombine.high %v574_v33, %v3123_v1 }
  0x59   : > { %580 = vrot.lane.b32.xlu0 %v575_v27, %s3129_s15 }
  0x5b   : > { %592 = vrot.lane.b32.xlu1 %v567_v26, %s3128_s18  ;;  %2760 = vmatpush3.bf16.xpose.msra.mxu0 %v690_v29 }
  0x5c   : > { %2761 = vmatprep.subr.bf16.mxu0 %v3123_v1 }
  0x5d   : > { %600 = vrot.lane.b32.xlu0 %v574_v33, %s3131_s20  ;;  %v2952_v33 = vld [vmem:[%s3361_s8 + $0x8] sm:$0xff]  }
  0x5f   : > { %588 = vrot.lane.b32.xlu1 %v576_v32, %s3130_s6  ;;  %v2949_v32 = vld [vmem:[%s3361_s8] sm:$0xff]  }
  0x63   : > { %596 = vrot.lane.b32.xlu1 %v577_v34, %s3132_s29  ;;  %2762 = vmatpush3.bf16.xpose.msra.mxu0 %v693_v30  ;;  %v2953_v34 = vld [vmem:[%s3361_s8 + $0x18] sm:$0xff]  }
  0x64   : > { %2763 = vmatprep.subr.bf16.mxu0 %v3123_v1 }
  0x67   : > { %604 = vrot.lane.b32.xlu1 %v578_v35, %s3133_s30  ;;  %v2941_v35 = vld [vmem:[%s3361_s8] sm:$0xff]  }
  0x6b   : > { %2764 = vmatpush3.bf16.xpose.msra.mxu0 %v696_v31 }
  0x6c   : > { %2765 = vmatprep.subr.bf16.mxu0 %v3123_v1 }
  0x73   : > { %2766 = vmatpush3.bf16.xpose.msra.mxu0 %v699_v37  ;;  %v2943_v37 = vld [vmem:[%s3361_s8 + $0x10] sm:$0xff]  }
  0x74   : > { %2767 = vmatprep.subr.bf16.mxu0 %v3123_v1 }
  0x7b   : > { %2768 = vmatpush3.bf16.xpose.msra.mxu0 %v702_v39  ;;  %v2946_v39 = vld [vmem:[%s3361_s8] sm:$0xff]  }
  0x7c   : > { %2769 = vmatprep.subr.bf16.mxu0 %v3123_v1 }
  0x83   : > { %2770 = vmatpush3.bf16.xpose.msra.mxu0 %v705_v41  ;;  %v2948_v41 = vld [vmem:[%s3361_s8 + $0x10] sm:$0xff]  }
  0x84   : > { %2771 = vmatprep.subr.bf16.mxu0 %v3123_v1 }
  0x8b   : > { %2772 = vmatpush3.bf16.xpose.msra.mxu0 %v708_v43  ;;  %v2951_v43 = vld [vmem:[%s3361_s8 + $0x10] sm:$0xff]  }
  0xb1   : > { %v635_v44 = vpop.trf.xlu0 }
  0xb2   : > { %2774 = vmatmul.mubr.msk.bf16.vlgmr.msra.gmra.mrb[0].mxu0 %vm607_vm1, %v635_v44 }
  0xc9   : > { %v585_v45 = vpop.permute.xlu1 %584 }
  0xcb   : > { %v581_v47 = vpop.permute.xlu0 %580 }
  0xcc   : > { %v608_v48 = vsel %vm607_vm1, %v551_v23, %v581_v47 }
  0xcd   : > { %v593_v46 = vpop.permute.xlu1 %592  ;;  %v610_v50 = vsel %vm609_vm2, %v608_v48, %v585_v45 }
  0xcf   : > { %v601_v55 = vpop.permute.xlu0 %600 }
  0xd1   : > { %v589_v49 = vpop.permute.xlu1 %588 }
  0xd2   : > { %v612_v51 = vsel %vm611_vm3, %v610_v50, %v589_v49 }
  0xd3   : > { %v614_v53 = vsel %vm613_vm4, %v612_v51, %v593_v46 }
  0xd5   : > { %v597_v52 = vpop.permute.xlu1 %596 }
  0xd6   : > { %v616_v54 = vsel %vm615_vm5, %v614_v53, %v597_v52 }
  0xd7   : > { %v618_v56 = vsel %vm617_vm6, %v616_v54, %v601_v55 }
  0xd9   : > { %v605_v57 = vpop.permute.xlu1 %604 }
  0xda   : > { %v620_v58 = vsel %vm619_vm7, %v618_v56, %v605_v57 }
 0x185   : > { %v744_v59 = vpop.f32.mrb[0].mxu0 }
 0x186   : > { %v745_v60 = vadd.f32 %v744_v59, %v620_v58  ;;  %v2775_v61 = vpop.f32.mrb[1].mxu0 }
 0x187   : > { %v747_v62 = vpop.f32.mrb[2].mxu0 }
 0x188   : > { %754 = vrot.lane.b32.xlu1 %v745_v60, %s3131_s20  ;;  %751 = vrot.lane.b32.xlu0 %v745_v60, %s3133_s30  ;;  %v2776_v63 = vpop.f32.mrb[3].mxu0  ;;  %s3138_s20 = smov [#allocation6]  }
 0x18c   : > { %760 = vrot.lane.b32.xlu1 %v745_v60, %s3128_s18  ;;  %757 = vrot.lane.b32.xlu0 %v745_v60, %s3132_s29  ;;  %s3682_s29 = sld [smem:[#allocation14_spill]]  ;;  %s3684_s18 = sld [smem:[#allocation12_spill]] }
 0x190   : > { %766 = vrot.lane.b32.xlu1 %v745_v60, %s3127_s10  ;;  %763 = vrot.lane.b32.xlu0 %v745_v60, %s3130_s6  ;;  %s2717_s6 = sshll.u32 %s3105_s25, 3 }
 0x194   : > { %769 = vrot.lane.b32.xlu0 %v745_v60, %s3129_s15 }
 0x1fa   : > { %v755_v0 = vpop.permute.xlu1 %754  ;;  %v752_v1 = vpop.permute.xlu0 %751 }
 0x1fb   : > { %v772_v7 = vcombine.low %v745_v60, %v755_v0 }
 0x1fd   : > { %v779_v12 = vrot.slane %v772_v7, %v3353_v11  ;;  %v2955_v7 = vld [vmem:[%s3361_s8 + $0x8] sm:$0xff]  }
 0x1fe   : > { %v761_v2 = vpop.permute.xlu1 %760  ;;  %v758_v3 = vpop.permute.xlu0 %757 }
 0x1ff   : > { %v780_v4 = vcombine.low %v752_v1, %v758_v3 }
 0x201   : > { %v787_v8 = vrot.slane %v780_v4, %v3353_v11 }
 0x202   : > { %v767_v5 = vpop.permute.xlu1 %766  ;;  %v764_v6 = vpop.permute.xlu0 %763 }
 0x203   : > { %v788_v9 = vcombine.low %v761_v2, %v767_v5  ;;  %v804_v15 = vcombine.low %v779_v12, %v787_v8  ;;  %v805_v18 = vcombine.high %v779_v12, %v787_v8  ;;  %v2956_v8 = vld [vmem:[%s3361_s8 + $0x18] sm:$0xff]  }
 0x205   : > { %v795_v16 = vrot.slane %v788_v9, %v3353_v11  ;;  %v812_v21 = vrot.slane %v804_v15, %v3369_v14  ;;  %v819_v26 = vrot.slane %v805_v18, %v3369_v14 }
 0x206   : > { %v770_v10 = vpop.permute.xlu0 %769 }
 0x207   : > { %v796_v13 = vcombine.low %v764_v6, %v770_v10  ;;  %v2954_v6 = vld [vmem:[%s3361_s8 + $0x10] sm:$0xff]  }
 0x209   : > { %v803_v17 = vrot.slane %v796_v13, %v3353_v11 }
 0x20b   : > { %v820_v19 = vcombine.low %v795_v16, %v803_v17  ;;  %v821_v20 = vcombine.high %v795_v16, %v803_v17 }
 0x20d   : > { %v828_v22 = vrot.slane %v820_v19, %v3369_v14  ;;  %v835_v23 = vrot.slane %v821_v20, %v3369_v14  ;;  %v2944_v14 = vld [vmem:[%s3361_s8] sm:$0xff]   ;;  %s3136_s8 = smov 8  }
 0x20f   : > { %v837_v24 = vcombine.high %v812_v21, %v828_v22  ;;  %v836_v25 = vcombine.low %v812_v21, %v828_v22  ;;  %v838_v28 = vcombine.low %v819_v26, %v835_v23  ;;  %v839_v30 = vcombine.high %v819_v26, %v835_v23 }
 0x211   : > { %v843_v27 = vsel %vm607_vm1, %v837_v24, -inf  ;;  %v840_v11 = vsel %vm607_vm1, %v836_v25, -inf  ;;  %v846_v29 = vsel %vm607_vm1, %v838_v28, -inf  ;;  %v849_v31 = vsel %vm607_vm1, %v839_v30, -inf }
 0x212   : > { %844 = vmax.xlane.f32.xlu0 %v843_v27  ;;  %841 = vmax.xlane.f32.xlu1 %v840_v11 }
 0x216   : > { %847 = vmax.xlane.f32.xlu0 %v846_v29 }
 0x21a   : > { %850 = vmax.xlane.f32.xlu0 %v849_v31 }
 0x230   : > { %1213 = vrot.lane.b32.xlu0 %v2944_v14, %s3134_s14 }
 0x234   : > { %1855 = vrot.lane.b32.xlu0 %v2949_v32, %s3135_s7 }
 0x238   : > { %1857 = vrot.lane.b32.xlu0 %v2952_v33, %s3135_s7 }
 0x23c   : > { %1861 = vrot.lane.b32.xlu0 %v2953_v34, %s3135_s7 }
 0x23f   : > { %920 = vxpose.xlu1.c.b16.start.end [1/1] (short) (narrow) %v2941_v35, 16 }
 0x243   : > { %1215 = vrot.lane.b32.xlu1 %v2942_v36, %s3134_s14 }
 0x247   : > { %1217 = vrot.lane.b32.xlu1 %v2943_v37, %s3134_s14 }
 0x24b   : > { %1219 = vrot.lane.b32.xlu1 %v2945_v38, %s3134_s14  ;;  %s2515_s14 = sadd.s32 %s3101_s24, %s2717_s6  ;;  %s2504_s6 = scalar_lea.sflag [#allocation5], %s3332_s11 }
 0x24c   : > { %s2718_s10 = sshll.u32 %s2515_s14, 7 }
 0x24f   : > { %1534 = vrot.lane.b32.xlu1 %v2946_v39, %s3133_s30 }
 0x253   : > { %1536 = vrot.lane.b32.xlu1 %v2947_v40, %s3133_s30 }
 0x257   : > { %1538 = vrot.lane.b32.xlu1 %v2948_v41, %s3133_s30 }
 0x25b   : > { %1540 = vrot.lane.b32.xlu1 %v2950_v42, %s3133_s30  ;;  %s3687_s30 = sld [smem:[#allocation17_spill]] }
 0x25f   : > { %1859 = vrot.lane.b32.xlu1 %v2951_v43, %s3135_s7  ;;  %s3688_s7 = sshll.u32 %s3332_s11, 5 }
 0x29f   : > { %v845_v44 = vpop.xlane.xlu0 %844  ;;  %v842_v45 = vpop.xlane.xlu1 %841 }
 0x2a0   : > { %v853_v46 = vsub.f32 %v837_v24, %v845_v44  ;;  %v852_v47 = vsub.f32 %v836_v25, %v842_v45 }
 0x2a2   : > { %v858_v48 = vmul.f32 1.442695, %v853_v46  ;;  %v856_v49 = vmul.f32 1.442695, %v852_v47 }
 0x2a3   : > { %v848_v50 = vpop.xlane.xlu0 %847 }
 0x2a4   : > { %2965 = vpow2.f32 %v858_v48  ;;  %v854_v51 = vsub.f32 %v838_v28, %v848_v50 }
 0x2a5   : > { %2967 = vpow2.f32 %v856_v49  ;;  %v928_v0 = vpop.trf.xlu1 }
 0x2a6   : > { %v860_v52 = vmul.f32 1.442695, %v854_v51 }
 0x2a7   : > { %v851_v53 = vpop.xlane.xlu0 %850 }
 0x2a8   : > { %2969 = vpow2.f32 %v860_v52  ;;  %v855_v54 = vsub.f32 %v839_v30, %v851_v53 }
 0x2aa   : > { %v862_v55 = vmul.f32 1.442695, %v855_v54 }
 0x2ab   : > { %v1214_v10 = vpop.permute.xlu0 %1213 }
 0x2ac   : > { %2971 = vpow2.f32 %v862_v55 }
 0x2ae   : > { %v2966_v56 = vpop.eup %2965 }
 0x2af   : > { %v2968_v57 = vpop.eup %2967  ;;  %v867_v58 = vsel %vm607_vm1, %v2966_v56, 0.0  ;;  %v1856_v13 = vpop.permute.xlu0 %1855 }
 0x2b0   : > { %868 = vadd.xlane.f32.xlu0 %v867_v58  ;;  %v864_v59 = vsel %vm607_vm1, %v2968_v57, 0.0 }
 0x2b1   : > { %865 = vadd.xlane.f32.xlu1 %v864_v59 }
 0x2b2   : > { %v2970_v60 = vpop.eup %2969 }
 0x2b3   : > { %v870_v61 = vsel %vm607_vm1, %v2970_v60, 0.0  ;;  %v1858_v16 = vpop.permute.xlu0 %1857 }
 0x2b5   : > { %871 = vadd.xlane.f32.xlu1 %v870_v61  ;;  %v1216_v1 = vpop.permute.xlu1 %1215 }
 0x2b6   : > { %v3453_v62 = vpop.eup %2971 }
 0x2b7   : > { %v873_v63 = vsel %vm607_vm1, %v3453_v62, 0.0  ;;  %v1862_v17 = vpop.permute.xlu0 %1861 }
 0x2b8   : > { %874 = vadd.xlane.f32.xlu0 %v873_v63 }
 0x2b9   : > { %v1218_v2 = vpop.permute.xlu1 %1217 }
 0x2bd   : > { %v1220_v3 = vpop.permute.xlu1 %1219 }
 0x2c1   : > { %v1535_v4 = vpop.permute.xlu1 %1534 }
 0x2c5   : > { %v1537_v5 = vpop.permute.xlu1 %1536 }
 0x2c9   : > { %v1539_v9 = vpop.permute.xlu1 %1538 }
 0x2cd   : > { %v1541_v12 = vpop.permute.xlu1 %1540 }
 0x2d1   : > { %v1860_v15 = vpop.permute.xlu1 %1859 }
 0x2e2   : > { %952 = vxpose.xlu1.c.b16.start.end [1/1] (short) (narrow) %v2954_v6, 16 }
 0x2e5   : > { %936 = vxpose.xlu0.c.b16.start.end [1/1] (short) (narrow) %v2955_v7, 16 }
 0x2e6   : > { %968 = vxpose.xlu1.c.b16.start.end [1/1] (short) (narrow) %v2956_v8, 16 }
 0x2e9   : > { %1578 = vxpose.xlu0.c.b16.start.end [1/1] (short) (narrow) %v1539_v9, 16 }
 0x2ea   : > { %1225 = vxpose.xlu1.c.b16.start.end [1/1] (short) (narrow) %v1214_v10, 16 }
 0x2ed   : > { %1867 = vxpose.xlu0.c.b16.start.end [1/1] (short) (narrow) %v1856_v13, 16 }
 0x2ee   : > { %1241 = vxpose.xlu1.c.b16.start.end [1/1] (short) (narrow) %v1216_v1, 16 }
 0x2f1   : > { %1899 = vxpose.xlu0.c.b16.start.end [1/1] (short) (narrow) %v1860_v15, 16 }
 0x2f2   : > { %1257 = vxpose.xlu1.c.b16.start.end [1/1] (short) (narrow) %v1218_v2, 16 }
 0x2f6   : > { %1273 = vxpose.xlu1.c.b16.start.end [1/1] (short) (narrow) %v1220_v3, 16 }
 0x2fa   : > { %1546 = vxpose.xlu1.c.b16.start.end [1/1] (short) (narrow) %v1535_v4, 16 }
 0x2fe   : > { %1562 = vxpose.xlu1.c.b16.start.end [1/1] (short) (narrow) %v1537_v5, 16 }
 0x302   : > { %1594 = vxpose.xlu1.c.b16.start.end [1/1] (short) (narrow) %v1541_v12, 16 }
 0x306   : > { %1883 = vxpose.xlu1.c.b16.start.end [1/1] (short) (narrow) %v1858_v16, 16 }
 0x30a   : > { %1915 = vxpose.xlu1.c.b16.start.end [1/1] (short) (narrow) %v1862_v17, 16 }
 0x33d   : > { %v869_v18 = vpop.xlane.xlu0 %868 }
 0x33e   : > { %2973 = vrcp.f32 %v869_v18  ;;  %v866_v19 = vpop.xlane.xlu1 %865 }
 0x33f   : > { %2975 = vrcp.f32 %v866_v19 }
 0x342   : > { %v872_v20 = vpop.xlane.xlu1 %871 }
 0x343   : > { %2977 = vrcp.f32 %v872_v20 }
 0x345   : > { %v875_v21 = vpop.xlane.xlu0 %874 }
 0x346   : > { %2979 = vrcp.f32 %v875_v21 }
 0x348   : > { %v2974_v22 = vpop.eup %2973  ;;  %v960_v23 = vpop.trf.xlu1 }
 0x349   : > { %v2976_v24 = vpop.eup %2975  ;;  %v881_v26 = vmul.f32 %v2974_v22, %v2966_v56 }
 0x34a   : > { %v880_v25 = vmul.f32 %v2976_v24, %v2968_v57 }
 0x34b   : > { %v944_v27 = vpop.trf.xlu0  ;;  %v885_v31 = vpack.c.bf16 %v881_v26, %v881_v26 }
 0x34c   : > { %v2669_v11 = vcombine.low %v928_v0, %v944_v27  ;;  %v976_v28 = vpop.trf.xlu1  ;;  %v884_v29 = vpack.c.bf16 %v880_v25, %v880_v25  ;;  %v2957_v27 = vld [vmem:[%s3650_s4] sm:$0xff]  }
 0x34d   : > { %v2978_v14 = vpop.eup %2977  ;;  %v2670_v34 = vcombine.low %v960_v23, %v976_v28  ;;  %v1306_v37 = vsel %vm607_vm1, %v885_v31, 0 }
 0x34e   : > { %2829 = vmatprep.subr.msk.bf16.mxu1 %vm607_vm1, %v884_v29  ;;  %v1001_v30 = vsel %vm607_vm1, %v884_v29, 0  ;;  %2779 = vmatprep.mubr.msk.bf16.mxu1 %vm607_vm1, %v2669_v11  ;;  %v882_v33 = vmul.f32 %v2978_v14, %v2970_v60  ;;  %v2958_v11 = vld [vmem:[%s3650_s4 + $0x8] sm:$0xff]  }
 0x34f   : > { %2778 = vmatpush3.bf16.xpose.msra.mxu1 %v1001_v30  ;;  %v1586_v47 = vpop.trf.xlu0 }
 0x350   : > { %2830 = vmatprep.subr.msk.bf16.mxu1 %vm607_vm1, %v885_v31  ;;  %v1233_v32 = vpop.trf.xlu1  ;;  %v886_v38 = vpack.c.bf16 %v882_v33, %v882_v33  ;;  %v2980_v39 = vpop.eup %2979 }
 0x351   : > { %v883_v41 = vmul.f32 %v2980_v39, %v3453_v62 }
 0x352   : > { %v1627_v44 = vsel %vm607_vm1, %v886_v38, 0 }
 0x353   : > { %v887_v45 = vpack.c.bf16 %v883_v41, %v883_v41  ;;  %v1875_v51 = vpop.trf.xlu0 }
 0x354   : > { %v1249_v35 = vpop.trf.xlu1 }
 0x355   : > { %v2677_v36 = vcombine.low %v1233_v32, %v1249_v35  ;;  %v1948_v53 = vsel %vm607_vm1, %v887_v45, 0 }
 0x356   : > { %2780 = vmatmul.mubr.msk.bf16.vlgmr.msra.gmra.mrb[0].mxu1 %vm607_vm1, %v2670_v34 }
 0x357   : > { %2784 = vmatpush3.bf16.xpose.msra.mxu1 %v1306_v37  ;;  %2785 = vmatprep.mubr.msk.bf16.mxu1 %vm607_vm1, %v2677_v36  ;;  %v1907_v56 = vpop.trf.xlu0 }
 0x358   : > { %2831 = vmatprep.subr.msk.bf16.mxu1 %vm607_vm1, %v886_v38  ;;  %v1265_v40 = vpop.trf.xlu1 }
 0x35c   : > { %v1281_v42 = vpop.trf.xlu1 }
 0x35d   : > { %v2678_v43 = vcombine.low %v1265_v40, %v1281_v42 }
 0x35f   : > { %2786 = vmatmul.mubr.msk.bf16.vlgmr.msra.gmra.mrb[4].mxu1 %vm607_vm1, %v2678_v43 }
 0x360   : > { %2790 = vmatpush3.bf16.xpose.msra.mxu1 %v1627_v44  ;;  %v1554_v46 = vpop.trf.xlu1 }
 0x361   : > { %2832 = vmatprep.subr.msk.bf16.mxu1 %vm607_vm1, %v887_v45 }
 0x364   : > { %v1570_v48 = vpop.trf.xlu1 }
 0x365   : > { %v2685_v49 = vcombine.low %v1554_v46, %v1570_v48  ;;  %v2150_v48 = vld [vmem:[%s3338_s17 + $0x10] sm:$0xff] }
 0x367   : > { %2791 = vmatprep.mubr.msk.bf16.mxu1 %vm607_vm1, %v2685_v49 }
 0x368   : > { %v1602_v50 = vpop.trf.xlu1 }
 0x369   : > { %v2686_v52 = vcombine.low %v1586_v47, %v1602_v50  ;;  %v2697_v47 = vld [vmem:[%s3651_s5] ss:$0 sm:$0xff] }
 0x36b   : > { %2792 = vmatmul.mubr.msk.bf16.vlgmr.msra.gmra.mrb[8].mxu1 %vm607_vm1, %v2686_v52 }
 0x36c   : > { %2796 = vmatpush3.bf16.xpose.msra.mxu1 %v1948_v53  ;;  %v1891_v54 = vpop.trf.xlu1 }
 0x36d   : > { %v2693_v55 = vcombine.low %v1875_v51, %v1891_v54  ;;  %2801 = vmatprep.subr.bf16.mxu1 %v2957_v27  ;;  %v2148_v51 = vld [vmem:[%s3338_s17] sm:$0xff] }
 0x36f   : > { %2797 = vmatprep.mubr.msk.bf16.mxu1 %vm607_vm1, %v2693_v55 }
 0x370   : > { %v1923_v57 = vpop.trf.xlu1 }
 0x371   : > { %v2694_v58 = vcombine.low %v1907_v56, %v1923_v57  ;;  %v2149_v56 = vld [vmem:[%s3338_s17 + $0x8] sm:$0xff] }
 0x373   : > { %2798 = vmatmul.mubr.msk.bf16.vlgmr.msra.gmra.mrb[12].mxu1 %vm607_vm1, %v2694_v58 }
 0x374   : > { %2802 = vmatpush3.bf16.msra.mxu1 %v2957_v27  ;;  %v2960_v27 = vld [vmem:[%s3682_s29 + $0x8] sm:$0xff]  }
 0x375   : > { %2803 = vmatprep.subr.bf16.mxu1 %v2958_v11 }
 0x378   : > { %2804 = vmatpush3.bf16.msra.mxu1 %v2958_v11  ;;  %v2961_v11 = vld [vmem:[%s3683_s16] sm:$0xff]  }
 0x429   : > { %v2781_v59 = vpop.f32.mrb[0].mxu1 }
 0x42a   : > { %v1037_v60 = vpop.f32.mrb[1].mxu1 }
 0x42b   : > { %v2782_v61 = vpop.f32.mrb[2].mxu1 }
 0x42c   : > { %v1040_v62 = vpop.f32.mrb[3].mxu1 }
 0x432   : > { %v2787_v63 = vpop.f32.mrb[4].mxu1 }
 0x433   : > { %1421 = vxpose.xlu0.b32.start.end [1/1] (short) (narrow) %v2787_v63, 8  ;;  %v1342_v0 = vpop.f32.mrb[5].mxu1 }
 0x434   : > { %v2788_v1 = vpop.f32.mrb[6].mxu1 }
 0x435   : > { %v1345_v2 = vpop.f32.mrb[7].mxu1 }
 0x436   : > { %1389 = vxpose.xlu1.b32.start.end [1/1] (short) (narrow) %v1345_v2, 8 }
 0x437   : > { %1357 = vxpose.xlu0.b32.start.end [1/1] (short) (narrow) %v1342_v0, 8 }
 0x43b   : > { %1453 = vxpose.xlu0.b32.start.end [1/1] (short) (narrow) %v2788_v1, 8 }
 0x43e   : > { %v2793_v3 = vpop.f32.mrb[8].mxu1 }
 0x43f   : > { %1742 = vxpose.xlu0.b32.start.end [1/1] (short) (narrow) %v2793_v3, 8  ;;  %v1663_v4 = vpop.f32.mrb[9].mxu1 }
 0x440   : > { %v2794_v5 = vpop.f32.mrb[10].mxu1 }
 0x441   : > { %1774 = vxpose.xlu1.b32.start.end [1/1] (short) (narrow) %v2794_v5, 8  ;;  %v1666_v6 = vpop.f32.mrb[11].mxu1 }
 0x443   : > { %1678 = vxpose.xlu0.b32.start.end [1/1] (short) (narrow) %v1663_v4, 8 }
 0x445   : > { %1710 = vxpose.xlu1.b32.start.end [1/1] (short) (narrow) %v1666_v6, 8 }
 0x446   : > { %v2799_v7 = vpop.f32.mrb[12].mxu1 }
 0x447   : > { %2063 = vxpose.xlu0.b32.start.end [1/1] (short) (narrow) %v2799_v7, 8  ;;  %v1984_v8 = vpop.f32.mrb[13].mxu1 }
 0x448   : > { %v2800_v9 = vpop.f32.mrb[14].mxu1 }
 0x449   : > { %2095 = vxpose.xlu1.b32.start.end [1/1] (short) (narrow) %v2800_v9, 8  ;;  %v1987_v10 = vpop.f32.mrb[15].mxu1 }
 0x44b   : > { %1999 = vxpose.xlu0.b32.start.end [1/1] (short) (narrow) %v1984_v8, 8 }
 0x44d   : > { %2031 = vxpose.xlu1.b32.start.end [1/1] (short) (narrow) %v1987_v10, 8 }
 0x44f   : > { %1084 = vxpose.xlu0.b32.start.end [1/1] (short) (narrow) %v1040_v62, 8  ;;  %v2151_v62 = vld [vmem:[%s3338_s17 + $0x18] sm:$0xff]  ;;  %s3685_s17 = sld [smem:[#allocation13_spill]] }
 0x453   : > { %1116 = vxpose.xlu0.b32.start.end [1/1] (short) (narrow) %v2781_v59, 8 }
 0x4b3   : > { %v1437_v12 = vpop.trf.xlu0 }
 0x4b4   : > { %1493 = vrot.lane.b32.xlu1 %v1437_v12, %s3136_s8 }
 0x4b6   : > { %v1405_v16 = vpop.trf.xlu1 }
 0x4b7   : > { %v1373_v13 = vpop.trf.xlu0 }
 0x4b8   : > { %1489 = vrot.lane.b32.xlu0 %v1373_v13, %s3136_s8 }
 0x4bb   : > { %v1469_v15 = vpop.trf.xlu0 }
 0x4bc   : > { %1495 = vrot.lane.b32.xlu1 %v1469_v15, %s3136_s8 }
 0x4bf   : > { %v1758_v17 = vpop.trf.xlu0 }
 0x4c0   : > { %1491 = vrot.lane.b32.xlu1 %v1405_v16, %s3136_s8 }
 0x4c1   : > { %v1790_v18 = vpop.trf.xlu1 }
 0x4c3   : > { %v1694_v19 = vpop.trf.xlu0 }
 0x4c4   : > { %1814 = vrot.lane.b32.xlu1 %v1758_v17, %s3129_s15 }
 0x4c5   : > { %v1726_v20 = vpop.trf.xlu1 }
 0x4c6   : > { %1812 = vrot.lane.b32.xlu0 %v1726_v20, %s3129_s15 }
 0x4c7   : > { %v2079_v21 = vpop.trf.xlu0 }
 0x4c8   : > { %1810 = vrot.lane.b32.xlu1 %v1694_v19, %s3129_s15 }
 0x4c9   : > { %v2111_v22 = vpop.trf.xlu1 }
 0x4ca   : > { %1816 = vrot.lane.b32.xlu0 %v1790_v18, %s3129_s15  ;;  %s3686_s15 = sld [smem:[#allocation15_spill]] }
 0x4cb   : > { %v2015_v23 = vpop.trf.xlu0 }
 0x4cc   : > { %2135 = vrot.lane.b32.xlu1 %v2079_v21, %s3137_s9 }
 0x4cd   : > { %v2047_v24 = vpop.trf.xlu1 }
 0x4ce   : > { %2137 = vrot.lane.b32.xlu0 %v2111_v22, %s3137_s9 }
 0x4cf   : > { %v1100_v25 = vpop.trf.xlu0 }
 0x4d0   : > { %2131 = vrot.lane.b32.xlu1 %v2015_v23, %s3137_s9  ;;  %1182 = vst.msk [vmem:[#allocation2 + $0x8] sm:$0xff] %vm1180_vm8, %v1100_v25 }
 0x4d2   : > { %2133 = vrot.lane.b32.xlu0 %v2047_v24, %s3137_s9  ;;  %s491_s9 = scalar_lea.vmem [#allocation6], %s3688_s7 }
 0x4d3   : > { %v1132_v26 = vpop.trf.xlu0  ;;  %s2518_s13 = sshll.u32 %s491_s9, 4  ;;  %s3579_s13 = int_to_ptr.vmem [resolvable:$true] %s2518_s13 }
 0x4d4   : > { %1183 = vst.msk [vmem:[#allocation2 + $0x10] sm:$0xff] %vm1180_vm8, %v1132_v26  ;;  %v2959_v26 = vld [vmem:[%s3682_s29] sm:$0xff]  }
 0x4d5   : > { %2809 = vmatprep.subr.bf16.mxu1 %v2959_v26 }
 0x4f0   : > { %1148 = vxpose.xlu0.b32.start.end [1/1] (short) (narrow) %v2782_v61, 8 }
 0x4f9   : > { %1052 = vxpose.xlu1.b32.start.end [1/1] (short) (narrow) %v1037_v60, 8 }
 0x526   : > { %v1494_v28 = vpop.permute.xlu1 %1493 }
 0x527   : > { %1504 = vst.msk [vmem:[#allocation2 + $0x10] sm:$0xff] %vm1501_vm9, %v1494_v28 }
 0x52a   : > { %v1490_v31 = vpop.permute.xlu0 %1489 }
 0x52e   : > { %v1496_v29 = vpop.permute.xlu1 %1495 }
 0x532   : > { %v1492_v30 = vpop.permute.xlu1 %1491 }
 0x533   : > { %1503 = vst.msk [vmem:[#allocation2 + $0x8] sm:$0xff] %vm1501_vm9, %v1492_v30 }
 0x536   : > { %v1815_v14 = vpop.permute.xlu1 %1814 }
 0x537   : > { %1825 = vst.msk [vmem:[#allocation2 + $0x10] sm:$0xff] %vm1822_vm10, %v1815_v14 }
 0x538   : > { %v1813_v32 = vpop.permute.xlu0 %1812 }
 0x539   : > { %1824 = vst.msk [vmem:[#allocation2 + $0x8] sm:$0xff] %vm1822_vm10, %v1813_v32 }
 0x53a   : > { %v1811_v33 = vpop.permute.xlu1 %1810 }
 0x53c   : > { %v1817_v34 = vpop.permute.xlu0 %1816 }
 0x53e   : > { %v2136_v35 = vpop.permute.xlu1 %2135 }
 0x53f   : > { %2146 = vst.msk [vmem:[#allocation2 + $0x10] sm:$0xff] %vm2143_vm11, %v2136_v35 }
 0x540   : > { %v2138_v36 = vpop.permute.xlu0 %2137 }
 0x542   : > { %v2132_v39 = vpop.permute.xlu1 %2131 }
 0x544   : > { %v2134_v37 = vpop.permute.xlu0 %2133 }
 0x545   : > { %2145 = vst.msk [vmem:[#allocation2 + $0x8] sm:$0xff] %vm2143_vm11, %v2134_v37 }
 0x546   : > { %v2154_v45 = vld [vmem:[#allocation2 + $0x10] sm:$0xff] }
 0x54c   : > { %v2153_v43 = vld [vmem:[#allocation2 + $0x8] sm:$0xff] }
 0x570   : > { %v1164_v38 = vpop.trf.xlu0 }
 0x571   : > { %1184 = vst.msk [vmem:[#allocation2 + $0x18] sm:$0xff] %vm1180_vm8, %v1164_v38 }
 0x572   : > { %1505 = vst.msk [vmem:[#allocation2 + $0x18] sm:$0xff] %vm1501_vm9, %v1496_v29 }
 0x573   : > { %1826 = vst.msk [vmem:[#allocation2 + $0x18] sm:$0xff] %vm1822_vm10, %v1817_v34 }
 0x574   : > { %2147 = vst.msk [vmem:[#allocation2 + $0x18] sm:$0xff] %vm2143_vm11, %v2138_v36 }
 0x579   : > { %v1068_v40 = vpop.trf.xlu1 }
 0x57a   : > { %1181 = vst.msk [vmem:[#allocation2] sm:$0xff] %vm1180_vm8, %v1068_v40 }
 0x57b   : > { %1502 = vst.msk [vmem:[#allocation2] sm:$0xff] %vm1501_vm9, %v1490_v31  ;;  %v2155_v41 = vld [vmem:[#allocation2 + $0x18] sm:$0xff] }
 0x57c   : > { %1823 = vst.msk [vmem:[#allocation2] sm:$0xff] %vm1822_vm10, %v1811_v33  ;;  %v2157_v46 = vpack.c.bf16 %v2155_v41, %v2154_v45  ;;  %v2702_v41 = vld [vmem:[%s3684_s18] ss:$0 sm:$0xff]  ;;  %s3689_s18 = sld [smem:[#allocation18_spill]] }
 0x57d   : > { %2144 = vst.msk [vmem:[#allocation2] sm:$0xff] %vm2143_vm11, %v2132_v39 }
 0x584   : > { %v2152_v42 = vld [vmem:[#allocation2] sm:$0xff] }
 0x585   : > { %v2156_v44 = vpack.c.bf16 %v2153_v43, %v2152_v42 }
 0x587   : > { %2805 = vmatprep.mubr.msk.bf16.mxu1 %vm609_vm2, %v2156_v44 }
 0x588   : > { %2806 = vmatmul.mubr.msk.bf16.vlgmr.msra.gmra.mrb[16].mxu1 %vm609_vm2, %v2157_v46 }
 0x589   : > { %2810 = vmatpush3.bf16.msra.mxu1 %v2959_v26 }
 0x58a   : > { %2811 = vmatprep.subr.bf16.mxu1 %v2960_v27 }
 0x58d   : > { %2812 = vmatpush3.bf16.msra.mxu1 %v2960_v27 }
 0x58e   : > { %2817 = vmatprep.subr.bf16.mxu1 %v2961_v11 }
 0x65b   : > { %v2807_v49 = vpop.f32.mrb[16].mxu1 }
 0x65c   : > { %v2230_v50 = vadd.f32 %v2807_v49, %v2697_v47  ;;  %v2221_v52 = vpop.f32.mrb[17].mxu1 }
 0x65d   : > { %v2222_v53 = vadd.f32 %v2697_v47, %v2221_v52  ;;  %v2808_v54 = vpop.f32.mrb[18].mxu1 }
 0x65e   : > { %v3514_v55 = vadd.f32 %v2230_v50, %v2150_v48  ;;  %v2224_v57 = vpop.f32.mrb[19].mxu1  ;;  %v2233_v60 = vadd.f32 %v2808_v54, %v2697_v47 }
 0x65f   : > { %v3517_v58 = vadd.f32 %v2222_v53, %v2148_v51  ;;  %v2225_v59 = vadd.f32 %v2697_v47, %v2224_v57  ;;  %v2703_v47 = vld [vmem:[%s3685_s17] ss:$0 sm:$0xff]  ;;  %s3019_s17 = scalar_lea.vmem %s3579_s13, 512 }
 0x660   : > { %v2248_v61 = vsel %vm609_vm2, %v3514_v55, 0.0  ;;  %v3528_v2 = vadd.f32 %v2233_v60, %v2151_v62  ;;  %v2963_v62 = vld [vmem:[%s3683_s16 + $0x10] sm:$0xff]   ;;  %p3020_p8 = scmp.ne.s32.totalorder %s3579_s13, %s3019_s17 }
 0x661   : > { %v3522_v63 = vadd.f32 %v2225_v59, %v2149_v56  ;;  %2249 = vadd.xlane.f32.xlu1 %v2248_v61  ;;  %v2242_v0 = vsel %vm609_vm2, %v3517_v58, 0.0  ;;  %v2962_v61 = vld [vmem:[%s3683_s16 + $0x8] sm:$0xff]  }
 0x662   : > { %2243 = vadd.xlane.f32.xlu0 %v2242_v0  ;;  %v2251_v3 = vsel %vm609_vm2, %v3528_v2, 0.0  ;;  %v2964_v0 = vld [vmem:[%s3683_s16 + $0x18] sm:$0xff]   ;;  %p3021_p11 = pnand %p3020_p8, %p3690_p0 }
 0x663   : > { %v2245_v1 = vsel %vm609_vm2, %v3522_v63, 0.0 }
 0x664   : > { %p3022_p13 = pneg %p3021_p11 }
 0x665   : > { %2246 = vadd.xlane.f32.xlu1 %v2245_v1  ;;  %v2704_v1 = vld [vmem:[%s3686_s15] ss:$0 sm:$0xff]  ;;  %s3587_s15 = scalar_lea.hbm %s3689_s18, %s2718_s10 }
 0x669   : > { %2252 = vadd.xlane.f32.xlu1 %v2251_v3 }
 0x6ee   : > { %v2250_v4 = vpop.xlane.xlu1 %2249 }
 0x6ef   : > { %v2257_v5 = vmul.f32 0.03125, %v2250_v4  ;;  %v2244_v6 = vpop.xlane.xlu0 %2243 }
 0x6f0   : > { %v2255_v7 = vmul.f32 0.03125, %v2244_v6 }
 0x6f1   : > { %v2261_v8 = vsub.f32 %v3514_v55, %v2257_v5 }
 0x6f2   : > { %v2259_v9 = vsub.f32 %v3517_v58, %v2255_v7  ;;  %v2247_v10 = vpop.xlane.xlu1 %2246 }
 0x6f3   : > { %v2256_v12 = vmul.f32 0.03125, %v2247_v10  ;;  %v2265_v18 = vmul.f32 %v2261_v8, %v2261_v8 }
 0x6f4   : > { %v2263_v13 = vmul.f32 %v2259_v9, %v2259_v9 }
 0x6f5   : > { %v2260_v15 = vsub.f32 %v3522_v63, %v2256_v12  ;;  %v2273_v23 = vsel %vm609_vm2, %v2265_v18, 0.0 }
 0x6f6   : > { %v2253_v16 = vpop.xlane.xlu1 %2252  ;;  %v2267_v17 = vsel %vm609_vm2, %v2263_v13, 0.0 }
 0x6f7   : > { %v2258_v19 = vmul.f32 0.03125, %v2253_v16  ;;  %2268 = vadd.xlane.f32.xlu0 %v2267_v17  ;;  %v2264_v20 = vmul.f32 %v2260_v15, %v2260_v15 }
 0x6f9   : > { %v2262_v21 = vsub.f32 %v3528_v2, %v2258_v19  ;;  %v2270_v22 = vsel %vm609_vm2, %v2264_v20, 0.0  ;;  %v2709_v19 = vld [vmem:[%s3687_s30] ss:$0 sm:$0xff]  ;;  %s3023_s30 = sshll.u32 %s3138_s20, 4  ;;  %s3024_s30 = int_to_ptr.vmem [resolvable:$false] %s3023_s30 }
 0x6fa   : > { %2271 = vadd.xlane.f32.xlu1 %v2270_v22  ;;  %s3025_s14 = scalar_lea.vmem %s3024_s30, 1024  ;;  %p3026_p1 = scmp.lt.s32.totalorder %s3579_s13, %s3024_s30 }
 0x6fb   : > { %2274 = vadd.xlane.f32.xlu0 %v2273_v23  ;;  %v2266_v24 = vmul.f32 %v2262_v21, %v2262_v21  ;;  %p3027_p4 = scmp.lt.s32.totalorder %s3025_s14, %s3019_s17 }
 0x6fd   : > { %v2276_v25 = vsel %vm609_vm2, %v2266_v24, 0.0  ;;  %p3028_p3 = por %p3027_p4, %p3026_p1 }
 0x6fe   : > { %2277 = vadd.xlane.f32.xlu1 %v2276_v25 }
 0x6ff   : > { %p3029_p6 = pnand %p3028_p3, %p3022_p13 }
 0x784   : > { %v2269_v28 = vpop.xlane.xlu0 %2268 }
 0x785   : > { %v2279_v29 = vmul.f32 0.03125, %v2269_v28 }
 0x787   : > { %v2283_v30 = vadd.f32 1e-05, %v2279_v29  ;;  %v2272_v31 = vpop.xlane.xlu1 %2271 }
 0x788   : > { %v2280_v14 = vmul.f32 0.03125, %v2272_v31  ;;  %v2275_v32 = vpop.xlane.xlu0 %2274 }
 0x789   : > { %2981 = vrsqrt.f32 %v2283_v30  ;;  %v2281_v33 = vmul.f32 0.03125, %v2275_v32 }
 0x78a   : > { %v2284_v34 = vadd.f32 1e-05, %v2280_v14 }
 0x78b   : > { %v2285_v35 = vadd.f32 1e-05, %v2281_v33  ;;  %v2278_v36 = vpop.xlane.xlu1 %2277 }
 0x78c   : > { %2983 = vrsqrt.f32 %v2284_v34  ;;  %v2282_v37 = vmul.f32 0.03125, %v2278_v36 }
 0x78d   : > { %2985 = vrsqrt.f32 %v2285_v35 }
 0x78e   : > { %v2286_v38 = vadd.f32 1e-05, %v2282_v37 }
 0x790   : > { %2987 = vrsqrt.f32 %v2286_v38 }
 0x793   : > { %v2982_v39 = vpop.eup %2981 }
 0x794   : > { %v2291_v40 = vmul.f32 %v2982_v39, %v2259_v9 }
 0x796   : > { %v2984_v42 = vpop.eup %2983  ;;  %v2301_v45 = vmul.f32 %v2702_v41, %v2291_v40 }
 0x797   : > { %v2986_v43 = vpop.eup %2985  ;;  %v2292_v44 = vmul.f32 %v2984_v42, %v2260_v15 }
 0x798   : > { %v2293_v46 = vmul.f32 %v2986_v43, %v2261_v8  ;;  %v2311_v52 = vadd.f32 %v2703_v47, %v2301_v45 }
 0x799   : > { %v2302_v48 = vmul.f32 %v2702_v41, %v2292_v44 }
 0x79a   : > { %v2988_v49 = vpop.eup %2987  ;;  %v2303_v50 = vmul.f32 %v2702_v41, %v2293_v46 }
 0x79b   : > { %v2294_v51 = vmul.f32 %v2988_v49, %v2262_v21  ;;  %v2312_v53 = vadd.f32 %v2703_v47, %v2302_v48 }
 0x79c   : > { %v2313_v57 = vadd.f32 %v2703_v47, %v2303_v50 }
 0x79d   : > { %v2304_v54 = vmul.f32 %v2702_v41, %v2294_v51  ;;  %v2315_v56 = vpack.c.bf16 %v2312_v53, %v2311_v52 }
 0x79f   : > { %2813 = vmatprep.mubr.msk.bf16.mxu1 %vm609_vm2, %v2315_v56  ;;  %v2314_v59 = vadd.f32 %v2703_v47, %v2304_v54 }
 0x7a1   : > { %v2316_v60 = vpack.c.bf16 %v2314_v59, %v2313_v57 }
 0x7a3   : > { %2814 = vmatmul.mubr.msk.bf16.vlgmr.msra.gmra.mrb[20].mxu1 %vm609_vm2, %v2316_v60 }
 0x7a4   : > { %2818 = vmatpush3.bf16.msra.mxu1 %v2961_v11 }
 0x7a5   : > { %2819 = vmatprep.subr.bf16.mxu1 %v2962_v61 }
 0x7a8   : > { %2820 = vmatpush3.bf16.msra.mxu1 %v2962_v61 }
 0x7a9   : > { %2821 = vmatprep.subr.bf16.mxu1 %v2963_v62 }
 0x7ac   : > { %2822 = vmatpush3.bf16.msra.mxu1 %v2963_v62 }
 0x7ad   : > { %2823 = vmatprep.subr.bf16.mxu1 %v2964_v0 }
 0x7b0   : > { %2824 = vmatpush3.bf16.msra.mxu1 %v2964_v0 }
 0x876   : > { %v2815_v3 = vpop.f32.mrb[20].mxu1 }
 0x877   : > { %v2389_v4 = vadd.f32 %v2815_v3, %v2704_v1  ;;  %v2380_v5 = vpop.f32.mrb[21].mxu1 }
 0x878   : > { %v2381_v6 = vadd.f32 %v2704_v1, %v2380_v5  ;;  %v2816_v7 = vpop.f32.mrb[22].mxu1 }
 0x879   : > { %v2392_v8 = vadd.f32 %v2816_v7, %v2704_v1  ;;  %v2383_v9 = vpop.f32.mrb[23].mxu1  ;;  %v2397_v12 = vmax.f32 %v2389_v4, 0.0 }
 0x87a   : > { %v2384_v10 = vadd.f32 %v2704_v1, %v2383_v9  ;;  %v2395_v15 = vmax.f32 %v2381_v6, 0.0 }
 0x87b   : > { %v2398_v13 = vmax.f32 %v2392_v8, 0.0 }
 0x87c   : > { %v2396_v16 = vmax.f32 %v2384_v10, 0.0 }
 0x87d   : > { %v2400_v17 = vpack.c.bf16 %v2398_v13, %v2397_v12 }
 0x87e   : > { %v2399_v18 = vpack.c.bf16 %v2396_v16, %v2395_v15 }
 0x880   : > { %2825 = vmatprep.mubr.msk.bf16.mxu1 %vm613_vm4, %v2399_v18 }
 0x881   : > { %2826 = vmatmul.mubr.msk.bf16.vlgmr.msra.gmra.mrb[24].mxu1 %vm613_vm4, %v2400_v17 }
 0x954   : > { %v2827_v20 = vpop.f32.mrb[24].mxu1 }
 0x955   : > { %v2489_v21 = vadd.f32 %v2827_v20, %v2709_v19  ;;  %v2480_v22 = vpop.f32.mrb[25].mxu1 }
 0x956   : > { %v2481_v23 = vadd.f32 %v2709_v19, %v2480_v22  ;;  %v2828_v24 = vpop.f32.mrb[26].mxu1 }
 0x957   : > { %v2497_v25 = vadd.f32 %v2489_v21, %v3514_v55  ;;  %v2492_v26 = vadd.f32 %v2828_v24, %v2709_v19  ;;  %v2483_v27 = vpop.f32.mrb[27].mxu1 }
 0x958   : > { %v2495_v11 = vadd.f32 %v2481_v23, %v3517_v58  ;;  %v2484_v28 = vadd.f32 %v2709_v19, %v2483_v27 }
 0x959   : > { %2501 = vst.msk [vmem:[%s491_s9 + $0x10] sm:$0xff] %vm609_vm2, %v2497_v25  ;;  %v2498_v29 = vadd.f32 %v2492_v26, %v3528_v2 }
 0x95a   : > { %2499 = vst.msk [vmem:[%s491_s9] sm:$0xff] %vm609_vm2, %v2495_v11  ;;  %v2496_v55 = vadd.f32 %v2484_v28, %v3522_v63 }
 0x95b   : > { %2502 = vst.msk [vmem:[%s491_s9 + $0x18] sm:$0xff] %vm609_vm2, %v2498_v29 }
 0x95c   : > { %2500 = vst.msk [vmem:[%s491_s9 + $0x8] sm:$0xff] %vm609_vm2, %v2496_v55 }
 0x95d   : > { %3032 = shalt.err (!%p3029_p6)
}
 0x95e   : > { %s3033_s7 = scalar_lea.hbm %s3587_s15, 512  ;;  %s3037_s24 = scalar_lea.hbm %s3689_s18, 2048 }
 0x95f   : > { %p3034_p7 = scmp.ne.s32.totalorder %s3587_s15, %s3033_s7  ;;  %p3038_p10 = scmp.lt.u32.totalorder %s3587_s15, %s3689_s18 }
 0x960   : > { %p3039_p9 = scmp.lt.u32.totalorder %s3037_s24, %s3033_s7  ;;  %p3041_p8 = scmp.lt.u32.totalorder %s3033_s7, %s3587_s15 }
 0x961   : > { %p3035_p2 = pnand %p3034_p7, %p3690_p0 }
 0x962   : > { %p3040_p12 = por %p3039_p9, %p3038_p10 }
 0x963   : > { %p3036_p5 = pneg %p3035_p2 }
 0x964   : > { %p3042_p11 = por %p3041_p8, %p3040_p12 }
 0x966   : > { %p3043_p13 = pnand %p3042_p11, %p3036_p5 }
 0x968   : > { %3046 = shalt.err (!%p3043_p13)
}
 0x969   : > { %s3139_s17 = smov 128   ;;  %s3140_s30 = smov 256  }
 0x96a   : > { %2835 = dma.vmem_to_hbm [thread:$0]  (%p3690_p0), %s3579_s13, 512, %s3587_s15, %s2504_s6, %s3139_s17, %s3140_s30, %s3136_s8  }
 0x96b PF: > { %s3691_s14 = sld [smem:[#allocation9_spill]]  ;;  %p2846_p1 = scmp.ge.s32.totalorder %s3117_s28, 2 }
 0x96c   : > { %p3692_p4 = scmp.ne.s32.totalorder %s3680_s21, 0 }
 0x96e   : > { %p2842_p3 = pnand %p2846_p1, %p3692_p4 }
 0x971   : > { %s2533_s9 = sand.u32 1, %s3691_s14  }
 0x972   : > { %s2534_s7 = scalar_lea.sflag [#allocation5], %s2533_s9 }
 0x973   : > { %3084 = dma.done.wait (!%p2842_p3), %s2534_s7, 512  }
 0x974   : > { %3086 = vsyncadd (!%p2842_p3), %s2534_s7, 4294966784  ;;  %s28_s28 = sadd.s32 1, %s3117_s28   ;;  %s3693_s19 = sld [smem:[#allocation10_spill]] }
 0x975   : > { %p25_p6 = scmp.ge.s32.totalorder %s28_s28, 6   ;;  %s3694_s11 = sld [smem:[#allocation11_spill]] }
 0x976   : > { %s3695_s21 = smov %s3093_s22  ;;  %s3696_s22 = smov %s3097_s23 }
 0x977   : > { %s3697_s23 = smov %s3284_s12  ;;  %s3698_s24 = smov %s3109_s26 }
 0x978   : > { %s3699_s25 = smov %s3113_s27  ;;  %27 = sbr.rel (!%p25_p6) target bundleno = 15 (0xf), region = 119 }
 0x97a   : > { %s3700_s26 = smov %s3693_s19 }
 0x97b   : > { %s3701_s27 = smov %s3694_s11 }
 0x97f   :  { %2539 = vsyncpa [#allocation4], 1 }
 0x980   :  { %2541 = vsyncpa [#allocation4 + $0x1], 1 }
 0x981   :  { %2542 = vsyncpa [#allocation5], 1 }
 0x982   :  { %2544 = vsyncpa [#allocation5 + $0x1], 1 }

</bundles_post_ra>
